<compile_context>
chip_gen: v6e
topology: v6e:2x2x1
jax: 0.10.0
libtpu: 0.0.40
codegen_flags: <defaults>
</compile_context>

<pallas_src>
import functools

import jax
import jax.numpy as jnp
import numpy as np
from jax.experimental import pallas as pl
from jax.experimental.pallas import tpu as pltpu

LANES = 128
SUBLANES = 8
MAX_TILE_ROWS = 512     # VMEM-safe cap for the (rows, 128) input tile
HIDDEN_DIM = 512
CLASS_NUM = 15


# ---------------------------------------------------------------------------
# Quantum fuzzy layer (QFuzzyLayer of k Q_Models), fused into one kernel
# ---------------------------------------------------------------------------
def _qfuzzy_kernel(coef_ref, x_ref, o_ref, *, k):
    """coef_ref: SMEM f32[k*6] = per model [P_re, P_im, Q_re, Q_im, R_re, R_im].
    x_ref:  VMEM (TR, 128) f32 tile of the flattened input.
    o_ref:  VMEM (k, TR, 128) f32 per-model circuit outputs."""
    x = x_ref[...].astype(jnp.float32)
    cx = jnp.cos(x)          # EUP; shared across all k models
    sx = jnp.sin(x)
    for j in range(k):       # static unroll, k is small (15)
        p_re = coef_ref[6 * j + 0]
        p_im = coef_ref[6 * j + 1]
        q_re = coef_ref[6 * j + 2]
        q_im = coef_ref[6 * j + 3]
        r_re = coef_ref[6 * j + 4]
        r_im = coef_ref[6 * j + 5]
        b_re = p_re + q_re * cx + r_re * sx
        b_im = p_im + q_im * cx + r_im * sx
        # <Z> = |a|^2 - |b|^2 and |a|^2 + |b|^2 = 1  =>  (<Z>+1)/2 = 1 - |b|^2
        o_ref[j] = 1.0 - (b_re * b_re + b_im * b_im)


def _precompose_coeffs(angles):
    """angles: f32[6] gate parameters of one Q_Model (rz0,ry0,rz1 of q_layer,
    then q_layer1).  Returns f32[6] = (P_re, P_im, Q_re, Q_im, R_re, R_im)
    such that <1|psi(x)> = P + Q cos(x) + R sin(x)."""
    c64 = jnp.complex64

    def ry(t):
        c = jnp.cos(t / 2).astype(c64)
        s = jnp.sin(t / 2).astype(c64)
        return jnp.stack([jnp.stack([c, -s]), jnp.stack([s, c])])

    def rz(t):
        e = jnp.exp(-0.5j * t.astype(c64))
        z = jnp.zeros((), c64)
        return jnp.stack([jnp.stack([e, z]), jnp.stack([z, jnp.conj(e)])])

    u1 = rz(angles[2]) @ ry(angles[1]) @ rz(angles[0])   # q_layer
    u2 = ry(angles[4]) @ rz(angles[3])                   # q_layer1; RZ(t5) = pure phase, dropped
    jmat = jnp.array([[0.0, -1.0], [1.0, 0.0]], dtype=c64)   # RY(x) = cos(x/2) I + sin(x/2) J
    m0 = u2 @ u1
    m1 = u2 @ jmat @ u1
    a_, b_, c_, d_ = m0[1, 0], m0[1, 1], m1[1, 0], m1[1, 1]
    p = (a_ + d_) / 2
    q = (a_ - d_) / 2
    r = (b_ + c_) / 2
    return jnp.stack([p.real, p.imag, q.real, q.imag, r.real, r.imag]).astype(jnp.float32)


def _pick_tile_rows(rows):
    """Largest power-of-two tile (in rows of 128 lanes) <= MAX_TILE_ROWS that
    divides `rows`, while keeping >= 2 grid steps when possible (v7x: 2 TCs)."""
    tr = SUBLANES
    while (tr * 2 <= MAX_TILE_ROWS
           and rows % (tr * 2) == 0
           and rows // (tr * 2) >= 2):
        tr *= 2
    return tr


def qfuzzy_layer(x_flat, q_angles):
    """x_flat: f32[n]; q_angles: f32[k, 6].  Returns f32[k, n] of per-model
    Q_Model outputs ((<Z>+1)/2) for every element of x_flat."""
    k = q_angles.shape[0]
    n = x_flat.shape[0]
    coef = jax.vmap(_precompose_coeffs)(q_angles.astype(jnp.float32)).reshape(-1)

    block = SUBLANES * LANES
    n_pad = ((n + block - 1) // block) * block   # no-op when n is already aligned
    if n_pad != n:
        x_flat = jnp.pad(x_flat, (0, n_pad - n))
    rows = n_pad // LANES
    x2d = x_flat.reshape(rows, LANES).astype(jnp.float32)

    tr = _pick_tile_rows(rows)
    grid = (rows // tr,)

    out = pl.pallas_call(
        functools.partial(_qfuzzy_kernel, k=k),
        out_shape=jax.ShapeDtypeStruct((k, rows, LANES), jnp.float32),
        grid=grid,
        in_specs=[
            pl.BlockSpec(memory_space=pltpu.MemorySpace.SMEM),   # P/Q/R coefficients
            pl.BlockSpec((tr, LANES), lambda i: (i, 0)),         # x tile
        ],
        out_specs=pl.BlockSpec((k, tr, LANES), lambda i: (0, i, 0)),
        compiler_params=pltpu.CompilerParams(
            dimension_semantics=("parallel",)),
    )(coef, x2d)

    out = out.reshape(k, n_pad)
    if n_pad != n:
        out = out[:, :n]
    return out


# ---------------------------------------------------------------------------
# Fusion head: classi(c_part + flinear(fuzzied))  (tiny, whole-array kernel)
# ---------------------------------------------------------------------------
def _fusion_head_kernel(fz_ref, c_ref, w1t_ref, b1_ref, w2t_ref, b2_ref, o_ref):
    h = jnp.dot(fz_ref[...], w1t_ref[...],
                preferred_element_type=jnp.float32,
                precision=jax.lax.Precision.HIGHEST)
    h = h + b1_ref[...] + c_ref[...]
    o_ref[...] = jnp.dot(h, w2t_ref[...],
                         preferred_element_type=jnp.float32,
                         precision=jax.lax.Precision.HIGHEST) + b2_ref[...]


# ---------------------------------------------------------------------------
# Full MyNetwork_JAFFE forward
# ---------------------------------------------------------------------------
def mynetwork_jaffe_forward(x, q_angles, flinear_w, flinear_b,
                            classi_w, classi_b, c_part):
    """x: f32[B,C,H,W]; q_angles: f32[k,6]; flinear_w: f32[hidden,k];
    flinear_b: f32[hidden]; classi_w: f32[k,hidden]; classi_b: f32[k];
    c_part: f32[B,hidden].  Returns f32[B,k]."""
    # TODO(synk): MyNetwork_JAFFE_DNN (self.class_layer) is not defined in the
    # provided spec; its output `c_part` is taken as an explicit input here.
    bsz = x.shape[0]
    k = q_angles.shape[0]

    x_flat = x.reshape(-1).astype(jnp.float32)
    qout = qfuzzy_layer(x_flat, q_angles)            # (k, N)
    qout = qout.reshape(k, bsz, -1)
    fuzzied = jnp.prod(qout, axis=-1).T              # (B, k) fuzzy-rule output

    out = pl.pallas_call(
        _fusion_head_kernel,
        out_shape=jax.ShapeDtypeStruct((bsz, k), jnp.float32),
    )(fuzzied,
      c_part.astype(jnp.float32),
      flinear_w.T.astype(jnp.float32),
      flinear_b.reshape(1, -1).astype(jnp.float32),
      classi_w.T.astype(jnp.float32),
      classi_b.reshape(1, -1).astype(jnp.float32))
    return out


# ---------------------------------------------------------------------------
# Pure-JAX references
# ---------------------------------------------------------------------------
def _qmodel_reference(x_flat, t):
    """complex64 reference of the full (un-simplified) Q_Model circuit."""
    a = jnp.ones_like(x_flat).astype(jnp.complex64)
    b = jnp.zeros_like(a)

    def ry(a, b, th):
        c, s = jnp.cos(th / 2), jnp.sin(th / 2)
        return c * a - s * b, s * a + c * b

    def rz(a, b, th):
        ph = jnp.exp(-0.5j * th.astype(jnp.complex64))
        return a * ph, b * jnp.conj(ph)

    a, b = ry(a, b, x_flat)
    a, b = rz(a, b, t[0]); a, b = ry(a, b, t[1]); a, b = rz(a, b, t[2])
    a, b = ry(a, b, x_flat)
    a, b = rz(a, b, t[3]); a, b = ry(a, b, t[4]); a, b = rz(a, b, t[5])
    z = jnp.abs(a) ** 2 - jnp.abs(b) ** 2
    return (z + 1.0) / 2.0


def _network_reference(x, q_angles, flinear_w, flinear_b, classi_w, classi_b, c_part):
    bsz = x.shape[0]
    k = q_angles.shape[0]
    xf = x.reshape(-1).astype(jnp.float32)
    qouts = jnp.stack([_qmodel_reference(xf, q_angles[j]) for j in range(k)], axis=-1)
    qouts = qouts.reshape(bsz, -1, k)
    fuzzied = jnp.prod(qouts, axis=1)                                # (B, k)
    fusion = c_part + jnp.dot(fuzzied, flinear_w.T,
                              precision=jax.lax.Precision.HIGHEST) + flinear_b
    return jnp.dot(fusion, classi_w.T,
                   precision=jax.lax.Precision.HIGHEST) + classi_b


if __name__ == "__main__":
    key = jax.random.PRNGKey(0)
    kx, kq, kw1, kb1, kw2, kb2 = jax.random.split(key, 6)

    B, C, H, W = 2, 4, 16, 16          # small NCHW input -> N = 2048 elements
    k = CLASS_NUM

    x = jax.random.normal(kx, (B, C, H, W), dtype=jnp.float32)
    q_angles = jax.random.uniform(kq, (k, 6), dtype=jnp.float32,
                                  minval=-jnp.pi, maxval=jnp.pi)
    flinear_w = 0.05 * jax.random.normal(kw1, (HIDDEN_DIM, k), dtype=jnp.float32)
    flinear_b = 0.05 * jax.random.normal(kb1, (HIDDEN_DIM,), dtype=jnp.float32)
    classi_w = 0.05 * jax.random.normal(kw2, (k, HIDDEN_DIM), dtype=jnp.float32)
    classi_b = 0.05 * jax.random.normal(kb2, (k,), dtype=jnp.float32)
    c_part = jnp.zeros((B, HIDDEN_DIM), dtype=jnp.float32)   # see TODO above

    out = mynetwork_jaffe_forward(x, q_angles, flinear_w, flinear_b,
                                  classi_w, classi_b, c_part)
    out = jax.block_until_ready(out)
    assert out.shape == (B, k)

    # 1) element-wise check of the Pallas quantum-fuzzy kernel against a
    #    complex64 reference of the full (un-simplified) circuit.
    xf = x.reshape(-1)
    q_kernel = qfuzzy_layer(xf, q_angles)                                # (k, N)
    q_ref = jnp.stack([_qmodel_reference(xf, q_angles[j]) for j in range(k)])
    np.testing.assert_allclose(np.asarray(q_kernel), np.asarray(q_ref),
                               rtol=2e-5, atol=2e-5)

    # 2) full-network output check.
    ref = _network_reference(x, q_angles, flinear_w, flinear_b,
                             classi_w, classi_b, c_part)
    np.testing.assert_allclose(np.asarray(out), np.asarray(ref),
                               rtol=1e-4, atol=1e-4)

    print("KERNEL_OK")
</pallas_src>

<mosaic_0001>
module attributes {stable_mosaic.version = 11 : i64} {
  func.func @_qfuzzy_kernel(%arg0: i32, %arg1: memref<90xf32, #tpu.memory_space<smem>>, %arg2: memref<8x128xf32, #tpu.memory_space<vmem>>, %arg3: memref<15x8x128xf32, #tpu.memory_space<vmem>>) attributes {dimension_semantics = [#tpu.dimension_semantics<parallel>], iteration_bounds = array<i64: 2>, scalar_prefetch = 0 : i64, scratch_operands = 0 : i64, tpu.core_type = #tpu.core_type<tc>, window_params = [{transform_indices = @transform_0, window_bounds = array<i64: 90>}, {transform_indices = @transform_1, window_bounds = array<i64: 8, 128>}, {transform_indices = @transform_2, window_bounds = array<i64: 15, 8, 128>}]} {
    %c0 = arith.constant 0 : index
    %c0_0 = arith.constant 0 : index
    %0 = vector.load %arg2[%c0, %c0_0] : memref<8x128xf32, #tpu.memory_space<vmem>>, vector<8x128xf32>
    %1 = math.cos %0 : vector<8x128xf32>
    %2 = math.sin %0 : vector<8x128xf32>
    %c0_1 = arith.constant 0 : index
    %3 = memref.load %arg1[%c0_1] : memref<90xf32, #tpu.memory_space<smem>>
    %c1 = arith.constant 1 : index
    %4 = memref.load %arg1[%c1] : memref<90xf32, #tpu.memory_space<smem>>
    %c2 = arith.constant 2 : index
    %5 = memref.load %arg1[%c2] : memref<90xf32, #tpu.memory_space<smem>>
    %c3 = arith.constant 3 : index
    %6 = memref.load %arg1[%c3] : memref<90xf32, #tpu.memory_space<smem>>
    %c4 = arith.constant 4 : index
    %7 = memref.load %arg1[%c4] : memref<90xf32, #tpu.memory_space<smem>>
    %c5 = arith.constant 5 : index
    %8 = memref.load %arg1[%c5] : memref<90xf32, #tpu.memory_space<smem>>
    %9 = vector.broadcast %5 : f32 to vector<8x128xf32>
    %10 = arith.mulf %9, %1 : vector<8x128xf32>
    %11 = vector.broadcast %3 : f32 to vector<8x128xf32>
    %12 = arith.addf %11, %10 : vector<8x128xf32>
    %13 = vector.broadcast %7 : f32 to vector<8x128xf32>
    %14 = arith.mulf %13, %2 : vector<8x128xf32>
    %15 = arith.addf %12, %14 : vector<8x128xf32>
    %16 = vector.broadcast %6 : f32 to vector<8x128xf32>
    %17 = arith.mulf %16, %1 : vector<8x128xf32>
    %18 = vector.broadcast %4 : f32 to vector<8x128xf32>
    %19 = arith.addf %18, %17 : vector<8x128xf32>
    %20 = vector.broadcast %8 : f32 to vector<8x128xf32>
    %21 = arith.mulf %20, %2 : vector<8x128xf32>
    %22 = arith.addf %19, %21 : vector<8x128xf32>
    %23 = arith.mulf %15, %15 : vector<8x128xf32>
    %24 = arith.mulf %22, %22 : vector<8x128xf32>
    %25 = arith.addf %23, %24 : vector<8x128xf32>
    %cst = arith.constant 1.000000e+00 : f32
    %26 = vector.broadcast %cst : f32 to vector<8x128xf32>
    %27 = arith.subf %26, %25 : vector<8x128xf32>
    %c0_2 = arith.constant 0 : index
    %c0_3 = arith.constant 0 : index
    %c0_4 = arith.constant 0 : index
    %28 = vector.load %arg3[%c0_2, %c0_3, %c0_4] : memref<15x8x128xf32, #tpu.memory_space<vmem>>, vector<1x8x128xf32>
    %29 = vector.shape_cast %28 : vector<1x8x128xf32> to vector<8x128xf32>
    %30 = vector.shape_cast %27 : vector<8x128xf32> to vector<1x8x128xf32>
    tpu.vector_store %arg3[%c0_2, %c0_3, %c0_4], %30 {strides = array<i32>} : memref<15x8x128xf32, #tpu.memory_space<vmem>>, vector<1x8x128xf32>,
    %c6 = arith.constant 6 : index
    %31 = memref.load %arg1[%c6] : memref<90xf32, #tpu.memory_space<smem>>
    %c7 = arith.constant 7 : index
    %32 = memref.load %arg1[%c7] : memref<90xf32, #tpu.memory_space<smem>>
    %c8 = arith.constant 8 : index
    %33 = memref.load %arg1[%c8] : memref<90xf32, #tpu.memory_space<smem>>
    %c9 = arith.constant 9 : index
    %34 = memref.load %arg1[%c9] : memref<90xf32, #tpu.memory_space<smem>>
    %c10 = arith.constant 10 : index
    %35 = memref.load %arg1[%c10] : memref<90xf32, #tpu.memory_space<smem>>
    %c11 = arith.constant 11 : index
    %36 = memref.load %arg1[%c11] : memref<90xf32, #tpu.memory_space<smem>>
    %37 = vector.broadcast %33 : f32 to vector<8x128xf32>
    %38 = arith.mulf %37, %1 : vector<8x128xf32>
    %39 = vector.broadcast %31 : f32 to vector<8x128xf32>
    %40 = arith.addf %39, %38 : vector<8x128xf32>
    %41 = vector.broadcast %35 : f32 to vector<8x128xf32>
    %42 = arith.mulf %41, %2 : vector<8x128xf32>
    %43 = arith.addf %40, %42 : vector<8x128xf32>
    %44 = vector.broadcast %34 : f32 to vector<8x128xf32>
    %45 = arith.mulf %44, %1 : vector<8x128xf32>
    %46 = vector.broadcast %32 : f32 to vector<8x128xf32>
    %47 = arith.addf %46, %45 : vector<8x128xf32>
    %48 = vector.broadcast %36 : f32 to vector<8x128xf32>
    %49 = arith.mulf %48, %2 : vector<8x128xf32>
    %50 = arith.addf %47, %49 : vector<8x128xf32>
    %51 = arith.mulf %43, %43 : vector<8x128xf32>
    %52 = arith.mulf %50, %50 : vector<8x128xf32>
    %53 = arith.addf %51, %52 : vector<8x128xf32>
    %cst_5 = arith.constant 1.000000e+00 : f32
    %54 = vector.broadcast %cst_5 : f32 to vector<8x128xf32>
    %55 = arith.subf %54, %53 : vector<8x128xf32>
    %c1_6 = arith.constant 1 : index
    %c0_7 = arith.constant 0 : index
    %c0_8 = arith.constant 0 : index
    %56 = vector.load %arg3[%c1_6, %c0_7, %c0_8] : memref<15x8x128xf32, #tpu.memory_space<vmem>>, vector<1x8x128xf32>
    %57 = vector.shape_cast %56 : vector<1x8x128xf32> to vector<8x128xf32>
    %58 = vector.shape_cast %55 : vector<8x128xf32> to vector<1x8x128xf32>
    tpu.vector_store %arg3[%c1_6, %c0_7, %c0_8], %58 {strides = array<i32>} : memref<15x8x128xf32, #tpu.memory_space<vmem>>, vector<1x8x128xf32>,
    %c12 = arith.constant 12 : index
    %59 = memref.load %arg1[%c12] : memref<90xf32, #tpu.memory_space<smem>>
    %c13 = arith.constant 13 : index
    %60 = memref.load %arg1[%c13] : memref<90xf32, #tpu.memory_space<smem>>
    %c14 = arith.constant 14 : index
    %61 = memref.load %arg1[%c14] : memref<90xf32, #tpu.memory_space<smem>>
    %c15 = arith.constant 15 : index
    %62 = memref.load %arg1[%c15] : memref<90xf32, #tpu.memory_space<smem>>
    %c16 = arith.constant 16 : index
    %63 = memref.load %arg1[%c16] : memref<90xf32, #tpu.memory_space<smem>>
    %c17 = arith.constant 17 : index
    %64 = memref.load %arg1[%c17] : memref<90xf32, #tpu.memory_space<smem>>
    %65 = vector.broadcast %61 : f32 to vector<8x128xf32>
    %66 = arith.mulf %65, %1 : vector<8x128xf32>
    %67 = vector.broadcast %59 : f32 to vector<8x128xf32>
    %68 = arith.addf %67, %66 : vector<8x128xf32>
    %69 = vector.broadcast %63 : f32 to vector<8x128xf32>
    %70 = arith.mulf %69, %2 : vector<8x128xf32>
    %71 = arith.addf %68, %70 : vector<8x128xf32>
    %72 = vector.broadcast %62 : f32 to vector<8x128xf32>
    %73 = arith.mulf %72, %1 : vector<8x128xf32>
    %74 = vector.broadcast %60 : f32 to vector<8x128xf32>
    %75 = arith.addf %74, %73 : vector<8x128xf32>
    %76 = vector.broadcast %64 : f32 to vector<8x128xf32>
    %77 = arith.mulf %76, %2 : vector<8x128xf32>
    %78 = arith.addf %75, %77 : vector<8x128xf32>
    %79 = arith.mulf %71, %71 : vector<8x128xf32>
    %80 = arith.mulf %78, %78 : vector<8x128xf32>
    %81 = arith.addf %79, %80 : vector<8x128xf32>
    %cst_9 = arith.constant 1.000000e+00 : f32
    %82 = vector.broadcast %cst_9 : f32 to vector<8x128xf32>
    %83 = arith.subf %82, %81 : vector<8x128xf32>
    %c2_10 = arith.constant 2 : index
    %c0_11 = arith.constant 0 : index
    %c0_12 = arith.constant 0 : index
    %84 = vector.load %arg3[%c2_10, %c0_11, %c0_12] : memref<15x8x128xf32, #tpu.memory_space<vmem>>, vector<1x8x128xf32>
    %85 = vector.shape_cast %84 : vector<1x8x128xf32> to vector<8x128xf32>
    %86 = vector.shape_cast %83 : vector<8x128xf32> to vector<1x8x128xf32>
    tpu.vector_store %arg3[%c2_10, %c0_11, %c0_12], %86 {strides = array<i32>} : memref<15x8x128xf32, #tpu.memory_space<vmem>>, vector<1x8x128xf32>,
    %c18 = arith.constant 18 : index
    %87 = memref.load %arg1[%c18] : memref<90xf32, #tpu.memory_space<smem>>
    %c19 = arith.constant 19 : index
    %88 = memref.load %arg1[%c19] : memref<90xf32, #tpu.memory_space<smem>>
    %c20 = arith.constant 20 : index
    %89 = memref.load %arg1[%c20] : memref<90xf32, #tpu.memory_space<smem>>
    %c21 = arith.constant 21 : index
    %90 = memref.load %arg1[%c21] : memref<90xf32, #tpu.memory_space<smem>>
    %c22 = arith.constant 22 : index
    %91 = memref.load %arg1[%c22] : memref<90xf32, #tpu.memory_space<smem>>
    %c23 = arith.constant 23 : index
    %92 = memref.load %arg1[%c23] : memref<90xf32, #tpu.memory_space<smem>>
    %93 = vector.broadcast %89 : f32 to vector<8x128xf32>
    %94 = arith.mulf %93, %1 : vector<8x128xf32>
    %95 = vector.broadcast %87 : f32 to vector<8x128xf32>
    %96 = arith.addf %95, %94 : vector<8x128xf32>
    %97 = vector.broadcast %91 : f32 to vector<8x128xf32>
    %98 = arith.mulf %97, %2 : vector<8x128xf32>
    %99 = arith.addf %96, %98 : vector<8x128xf32>
    %100 = vector.broadcast %90 : f32 to vector<8x128xf32>
    %101 = arith.mulf %100, %1 : vector<8x128xf32>
    %102 = vector.broadcast %88 : f32 to vector<8x128xf32>
    %103 = arith.addf %102, %101 : vector<8x128xf32>
    %104 = vector.broadcast %92 : f32 to vector<8x128xf32>
    %105 = arith.mulf %104, %2 : vector<8x128xf32>
    %106 = arith.addf %103, %105 : vector<8x128xf32>
    %107 = arith.mulf %99, %99 : vector<8x128xf32>
    %108 = arith.mulf %106, %106 : vector<8x128xf32>
    %109 = arith.addf %107, %108 : vector<8x128xf32>
    %cst_13 = arith.constant 1.000000e+00 : f32
    %110 = vector.broadcast %cst_13 : f32 to vector<8x128xf32>
    %111 = arith.subf %110, %109 : vector<8x128xf32>
    %c3_14 = arith.constant 3 : index
    %c0_15 = arith.constant 0 : index
    %c0_16 = arith.constant 0 : index
    %112 = vector.load %arg3[%c3_14, %c0_15, %c0_16] : memref<15x8x128xf32, #tpu.memory_space<vmem>>, vector<1x8x128xf32>
    %113 = vector.shape_cast %112 : vector<1x8x128xf32> to vector<8x128xf32>
    %114 = vector.shape_cast %111 : vector<8x128xf32> to vector<1x8x128xf32>
    tpu.vector_store %arg3[%c3_14, %c0_15, %c0_16], %114 {strides = array<i32>} : memref<15x8x128xf32, #tpu.memory_space<vmem>>, vector<1x8x128xf32>,
    %c24 = arith.constant 24 : index
    %115 = memref.load %arg1[%c24] : memref<90xf32, #tpu.memory_space<smem>>
    %c25 = arith.constant 25 : index
    %116 = memref.load %arg1[%c25] : memref<90xf32, #tpu.memory_space<smem>>
    %c26 = arith.constant 26 : index
    %117 = memref.load %arg1[%c26] : memref<90xf32, #tpu.memory_space<smem>>
    %c27 = arith.constant 27 : index
    %118 = memref.load %arg1[%c27] : memref<90xf32, #tpu.memory_space<smem>>
    %c28 = arith.constant 28 : index
    %119 = memref.load %arg1[%c28] : memref<90xf32, #tpu.memory_space<smem>>
    %c29 = arith.constant 29 : index
    %120 = memref.load %arg1[%c29] : memref<90xf32, #tpu.memory_space<smem>>
    %121 = vector.broadcast %117 : f32 to vector<8x128xf32>
    %122 = arith.mulf %121, %1 : vector<8x128xf32>
    %123 = vector.broadcast %115 : f32 to vector<8x128xf32>
    %124 = arith.addf %123, %122 : vector<8x128xf32>
    %125 = vector.broadcast %119 : f32 to vector<8x128xf32>
    %126 = arith.mulf %125, %2 : vector<8x128xf32>
    %127 = arith.addf %124, %126 : vector<8x128xf32>
    %128 = vector.broadcast %118 : f32 to vector<8x128xf32>
    %129 = arith.mulf %128, %1 : vector<8x128xf32>
    %130 = vector.broadcast %116 : f32 to vector<8x128xf32>
    %131 = arith.addf %130, %129 : vector<8x128xf32>
    %132 = vector.broadcast %120 : f32 to vector<8x128xf32>
    %133 = arith.mulf %132, %2 : vector<8x128xf32>
    %134 = arith.addf %131, %133 : vector<8x128xf32>
    %135 = arith.mulf %127, %127 : vector<8x128xf32>
    %136 = arith.mulf %134, %134 : vector<8x128xf32>
    %137 = arith.addf %135, %136 : vector<8x128xf32>
    %cst_17 = arith.constant 1.000000e+00 : f32
    %138 = vector.broadcast %cst_17 : f32 to vector<8x128xf32>
    %139 = arith.subf %138, %137 : vector<8x128xf32>
    %c4_18 = arith.constant 4 : index
    %c0_19 = arith.constant 0 : index
    %c0_20 = arith.constant 0 : index
    %140 = vector.load %arg3[%c4_18, %c0_19, %c0_20] : memref<15x8x128xf32, #tpu.memory_space<vmem>>, vector<1x8x128xf32>
    %141 = vector.shape_cast %140 : vector<1x8x128xf32> to vector<8x128xf32>
    %142 = vector.shape_cast %139 : vector<8x128xf32> to vector<1x8x128xf32>
    tpu.vector_store %arg3[%c4_18, %c0_19, %c0_20], %142 {strides = array<i32>} : memref<15x8x128xf32, #tpu.memory_space<vmem>>, vector<1x8x128xf32>,
    %c30 = arith.constant 30 : index
    %143 = memref.load %arg1[%c30] : memref<90xf32, #tpu.memory_space<smem>>
    %c31 = arith.constant 31 : index
    %144 = memref.load %arg1[%c31] : memref<90xf32, #tpu.memory_space<smem>>
    %c32 = arith.constant 32 : index
    %145 = memref.load %arg1[%c32] : memref<90xf32, #tpu.memory_space<smem>>
    %c33 = arith.constant 33 : index
    %146 = memref.load %arg1[%c33] : memref<90xf32, #tpu.memory_space<smem>>
    %c34 = arith.constant 34 : index
    %147 = memref.load %arg1[%c34] : memref<90xf32, #tpu.memory_space<smem>>
    %c35 = arith.constant 35 : index
    %148 = memref.load %arg1[%c35] : memref<90xf32, #tpu.memory_space<smem>>
    %149 = vector.broadcast %145 : f32 to vector<8x128xf32>
    %150 = arith.mulf %149, %1 : vector<8x128xf32>
    %151 = vector.broadcast %143 : f32 to vector<8x128xf32>
    %152 = arith.addf %151, %150 : vector<8x128xf32>
    %153 = vector.broadcast %147 : f32 to vector<8x128xf32>
    %154 = arith.mulf %153, %2 : vector<8x128xf32>
    %155 = arith.addf %152, %154 : vector<8x128xf32>
    %156 = vector.broadcast %146 : f32 to vector<8x128xf32>
    %157 = arith.mulf %156, %1 : vector<8x128xf32>
    %158 = vector.broadcast %144 : f32 to vector<8x128xf32>
    %159 = arith.addf %158, %157 : vector<8x128xf32>
    %160 = vector.broadcast %148 : f32 to vector<8x128xf32>
    %161 = arith.mulf %160, %2 : vector<8x128xf32>
    %162 = arith.addf %159, %161 : vector<8x128xf32>
    %163 = arith.mulf %155, %155 : vector<8x128xf32>
    %164 = arith.mulf %162, %162 : vector<8x128xf32>
    %165 = arith.addf %163, %164 : vector<8x128xf32>
    %cst_21 = arith.constant 1.000000e+00 : f32
    %166 = vector.broadcast %cst_21 : f32 to vector<8x128xf32>
    %167 = arith.subf %166, %165 : vector<8x128xf32>
    %c5_22 = arith.constant 5 : index
    %c0_23 = arith.constant 0 : index
    %c0_24 = arith.constant 0 : index
    %168 = vector.load %arg3[%c5_22, %c0_23, %c0_24] : memref<15x8x128xf32, #tpu.memory_space<vmem>>, vector<1x8x128xf32>
    %169 = vector.shape_cast %168 : vector<1x8x128xf32> to vector<8x128xf32>
    %170 = vector.shape_cast %167 : vector<8x128xf32> to vector<1x8x128xf32>
    tpu.vector_store %arg3[%c5_22, %c0_23, %c0_24], %170 {strides = array<i32>} : memref<15x8x128xf32, #tpu.memory_space<vmem>>, vector<1x8x128xf32>,
    %c36 = arith.constant 36 : index
    %171 = memref.load %arg1[%c36] : memref<90xf32, #tpu.memory_space<smem>>
    %c37 = arith.constant 37 : index
    %172 = memref.load %arg1[%c37] : memref<90xf32, #tpu.memory_space<smem>>
    %c38 = arith.constant 38 : index
    %173 = memref.load %arg1[%c38] : memref<90xf32, #tpu.memory_space<smem>>
    %c39 = arith.constant 39 : index
    %174 = memref.load %arg1[%c39] : memref<90xf32, #tpu.memory_space<smem>>
    %c40 = arith.constant 40 : index
    %175 = memref.load %arg1[%c40] : memref<90xf32, #tpu.memory_space<smem>>
    %c41 = arith.constant 41 : index
    %176 = memref.load %arg1[%c41] : memref<90xf32, #tpu.memory_space<smem>>
    %177 = vector.broadcast %173 : f32 to vector<8x128xf32>
    %178 = arith.mulf %177, %1 : vector<8x128xf32>
    %179 = vector.broadcast %171 : f32 to vector<8x128xf32>
    %180 = arith.addf %179, %178 : vector<8x128xf32>
    %181 = vector.broadcast %175 : f32 to vector<8x128xf32>
    %182 = arith.mulf %181, %2 : vector<8x128xf32>
    %183 = arith.addf %180, %182 : vector<8x128xf32>
    %184 = vector.broadcast %174 : f32 to vector<8x128xf32>
    %185 = arith.mulf %184, %1 : vector<8x128xf32>
    %186 = vector.broadcast %172 : f32 to vector<8x128xf32>
    %187 = arith.addf %186, %185 : vector<8x128xf32>
    %188 = vector.broadcast %176 : f32 to vector<8x128xf32>
    %189 = arith.mulf %188, %2 : vector<8x128xf32>
    %190 = arith.addf %187, %189 : vector<8x128xf32>
    %191 = arith.mulf %183, %183 : vector<8x128xf32>
    %192 = arith.mulf %190, %190 : vector<8x128xf32>
    %193 = arith.addf %191, %192 : vector<8x128xf32>
    %cst_25 = arith.constant 1.000000e+00 : f32
    %194 = vector.broadcast %cst_25 : f32 to vector<8x128xf32>
    %195 = arith.subf %194, %193 : vector<8x128xf32>
    %c6_26 = arith.constant 6 : index
    %c0_27 = arith.constant 0 : index
    %c0_28 = arith.constant 0 : index
    %196 = vector.load %arg3[%c6_26, %c0_27, %c0_28] : memref<15x8x128xf32, #tpu.memory_space<vmem>>, vector<1x8x128xf32>
    %197 = vector.shape_cast %196 : vector<1x8x128xf32> to vector<8x128xf32>
    %198 = vector.shape_cast %195 : vector<8x128xf32> to vector<1x8x128xf32>
    tpu.vector_store %arg3[%c6_26, %c0_27, %c0_28], %198 {strides = array<i32>} : memref<15x8x128xf32, #tpu.memory_space<vmem>>, vector<1x8x128xf32>,
    %c42 = arith.constant 42 : index
    %199 = memref.load %arg1[%c42] : memref<90xf32, #tpu.memory_space<smem>>
    %c43 = arith.constant 43 : index
    %200 = memref.load %arg1[%c43] : memref<90xf32, #tpu.memory_space<smem>>
    %c44 = arith.constant 44 : index
    %201 = memref.load %arg1[%c44] : memref<90xf32, #tpu.memory_space<smem>>
    %c45 = arith.constant 45 : index
    %202 = memref.load %arg1[%c45] : memref<90xf32, #tpu.memory_space<smem>>
    %c46 = arith.constant 46 : index
    %203 = memref.load %arg1[%c46] : memref<90xf32, #tpu.memory_space<smem>>
    %c47 = arith.constant 47 : index
    %204 = memref.load %arg1[%c47] : memref<90xf32, #tpu.memory_space<smem>>
    %205 = vector.broadcast %201 : f32 to vector<8x128xf32>
    %206 = arith.mulf %205, %1 : vector<8x128xf32>
    %207 = vector.broadcast %199 : f32 to vector<8x128xf32>
    %208 = arith.addf %207, %206 : vector<8x128xf32>
    %209 = vector.broadcast %203 : f32 to vector<8x128xf32>
    %210 = arith.mulf %209, %2 : vector<8x128xf32>
    %211 = arith.addf %208, %210 : vector<8x128xf32>
    %212 = vector.broadcast %202 : f32 to vector<8x128xf32>
    %213 = arith.mulf %212, %1 : vector<8x128xf32>
    %214 = vector.broadcast %200 : f32 to vector<8x128xf32>
    %215 = arith.addf %214, %213 : vector<8x128xf32>
    %216 = vector.broadcast %204 : f32 to vector<8x128xf32>
    %217 = arith.mulf %216, %2 : vector<8x128xf32>
    %218 = arith.addf %215, %217 : vector<8x128xf32>
    %219 = arith.mulf %211, %211 : vector<8x128xf32>
    %220 = arith.mulf %218, %218 : vector<8x128xf32>
    %221 = arith.addf %219, %220 : vector<8x128xf32>
    %cst_29 = arith.constant 1.000000e+00 : f32
    %222 = vector.broadcast %cst_29 : f32 to vector<8x128xf32>
    %223 = arith.subf %222, %221 : vector<8x128xf32>
    %c7_30 = arith.constant 7 : index
    %c0_31 = arith.constant 0 : index
    %c0_32 = arith.constant 0 : index
    %224 = vector.load %arg3[%c7_30, %c0_31, %c0_32] : memref<15x8x128xf32, #tpu.memory_space<vmem>>, vector<1x8x128xf32>
    %225 = vector.shape_cast %224 : vector<1x8x128xf32> to vector<8x128xf32>
    %226 = vector.shape_cast %223 : vector<8x128xf32> to vector<1x8x128xf32>
    tpu.vector_store %arg3[%c7_30, %c0_31, %c0_32], %226 {strides = array<i32>} : memref<15x8x128xf32, #tpu.memory_space<vmem>>, vector<1x8x128xf32>,
    %c48 = arith.constant 48 : index
    %227 = memref.load %arg1[%c48] : memref<90xf32, #tpu.memory_space<smem>>
    %c49 = arith.constant 49 : index
    %228 = memref.load %arg1[%c49] : memref<90xf32, #tpu.memory_space<smem>>
    %c50 = arith.constant 50 : index
    %229 = memref.load %arg1[%c50] : memref<90xf32, #tpu.memory_space<smem>>
    %c51 = arith.constant 51 : index
    %230 = memref.load %arg1[%c51] : memref<90xf32, #tpu.memory_space<smem>>
    %c52 = arith.constant 52 : index
    %231 = memref.load %arg1[%c52] : memref<90xf32, #tpu.memory_space<smem>>
    %c53 = arith.constant 53 : index
    %232 = memref.load %arg1[%c53] : memref<90xf32, #tpu.memory_space<smem>>
    %233 = vector.broadcast %229 : f32 to vector<8x128xf32>
    %234 = arith.mulf %233, %1 : vector<8x128xf32>
    %235 = vector.broadcast %227 : f32 to vector<8x128xf32>
    %236 = arith.addf %235, %234 : vector<8x128xf32>
    %237 = vector.broadcast %231 : f32 to vector<8x128xf32>
    %238 = arith.mulf %237, %2 : vector<8x128xf32>
    %239 = arith.addf %236, %238 : vector<8x128xf32>
    %240 = vector.broadcast %230 : f32 to vector<8x128xf32>
    %241 = arith.mulf %240, %1 : vector<8x128xf32>
    %242 = vector.broadcast %228 : f32 to vector<8x128xf32>
    %243 = arith.addf %242, %241 : vector<8x128xf32>
    %244 = vector.broadcast %232 : f32 to vector<8x128xf32>
    %245 = arith.mulf %244, %2 : vector<8x128xf32>
    %246 = arith.addf %243, %245 : vector<8x128xf32>
    %247 = arith.mulf %239, %239 : vector<8x128xf32>
    %248 = arith.mulf %246, %246 : vector<8x128xf32>
    %249 = arith.addf %247, %248 : vector<8x128xf32>
    %cst_33 = arith.constant 1.000000e+00 : f32
    %250 = vector.broadcast %cst_33 : f32 to vector<8x128xf32>
    %251 = arith.subf %250, %249 : vector<8x128xf32>
    %c8_34 = arith.constant 8 : index
    %c0_35 = arith.constant 0 : index
    %c0_36 = arith.constant 0 : index
    %252 = vector.load %arg3[%c8_34, %c0_35, %c0_36] : memref<15x8x128xf32, #tpu.memory_space<vmem>>, vector<1x8x128xf32>
    %253 = vector.shape_cast %252 : vector<1x8x128xf32> to vector<8x128xf32>
    %254 = vector.shape_cast %251 : vector<8x128xf32> to vector<1x8x128xf32>
    tpu.vector_store %arg3[%c8_34, %c0_35, %c0_36], %254 {strides = array<i32>} : memref<15x8x128xf32, #tpu.memory_space<vmem>>, vector<1x8x128xf32>,
    %c54 = arith.constant 54 : index
    %255 = memref.load %arg1[%c54] : memref<90xf32, #tpu.memory_space<smem>>
    %c55 = arith.constant 55 : index
    %256 = memref.load %arg1[%c55] : memref<90xf32, #tpu.memory_space<smem>>
    %c56 = arith.constant 56 : index
    %257 = memref.load %arg1[%c56] : memref<90xf32, #tpu.memory_space<smem>>
    %c57 = arith.constant 57 : index
    %258 = memref.load %arg1[%c57] : memref<90xf32, #tpu.memory_space<smem>>
    %c58 = arith.constant 58 : index
    %259 = memref.load %arg1[%c58] : memref<90xf32, #tpu.memory_space<smem>>
    %c59 = arith.constant 59 : index
    %260 = memref.load %arg1[%c59] : memref<90xf32, #tpu.memory_space<smem>>
    %261 = vector.broadcast %257 : f32 to vector<8x128xf32>
    %262 = arith.mulf %261, %1 : vector<8x128xf32>
    %263 = vector.broadcast %255 : f32 to vector<8x128xf32>
    %264 = arith.addf %263, %262 : vector<8x128xf32>
    %265 = vector.broadcast %259 : f32 to vector<8x128xf32>
    %266 = arith.mulf %265, %2 : vector<8x128xf32>
    %267 = arith.addf %264, %266 : vector<8x128xf32>
    %268 = vector.broadcast %258 : f32 to vector<8x128xf32>
    %269 = arith.mulf %268, %1 : vector<8x128xf32>
    %270 = vector.broadcast %256 : f32 to vector<8x128xf32>
    %271 = arith.addf %270, %269 : vector<8x128xf32>
    %272 = vector.broadcast %260 : f32 to vector<8x128xf32>
    %273 = arith.mulf %272, %2 : vector<8x128xf32>
    %274 = arith.addf %271, %273 : vector<8x128xf32>
    %275 = arith.mulf %267, %267 : vector<8x128xf32>
    %276 = arith.mulf %274, %274 : vector<8x128xf32>
    %277 = arith.addf %275, %276 : vector<8x128xf32>
    %cst_37 = arith.constant 1.000000e+00 : f32
    %278 = vector.broadcast %cst_37 : f32 to vector<8x128xf32>
    %279 = arith.subf %278, %277 : vector<8x128xf32>
    %c9_38 = arith.constant 9 : index
    %c0_39 = arith.constant 0 : index
    %c0_40 = arith.constant 0 : index
    %280 = vector.load %arg3[%c9_38, %c0_39, %c0_40] : memref<15x8x128xf32, #tpu.memory_space<vmem>>, vector<1x8x128xf32>
    %281 = vector.shape_cast %280 : vector<1x8x128xf32> to vector<8x128xf32>
    %282 = vector.shape_cast %279 : vector<8x128xf32> to vector<1x8x128xf32>
    tpu.vector_store %arg3[%c9_38, %c0_39, %c0_40], %282 {strides = array<i32>} : memref<15x8x128xf32, #tpu.memory_space<vmem>>, vector<1x8x128xf32>,
    %c60 = arith.constant 60 : index
    %283 = memref.load %arg1[%c60] : memref<90xf32, #tpu.memory_space<smem>>
    %c61 = arith.constant 61 : index
    %284 = memref.load %arg1[%c61] : memref<90xf32, #tpu.memory_space<smem>>
    %c62 = arith.constant 62 : index
    %285 = memref.load %arg1[%c62] : memref<90xf32, #tpu.memory_space<smem>>
    %c63 = arith.constant 63 : index
    %286 = memref.load %arg1[%c63] : memref<90xf32, #tpu.memory_space<smem>>
    %c64 = arith.constant 64 : index
    %287 = memref.load %arg1[%c64] : memref<90xf32, #tpu.memory_space<smem>>
    %c65 = arith.constant 65 : index
    %288 = memref.load %arg1[%c65] : memref<90xf32, #tpu.memory_space<smem>>
    %289 = vector.broadcast %285 : f32 to vector<8x128xf32>
    %290 = arith.mulf %289, %1 : vector<8x128xf32>
    %291 = vector.broadcast %283 : f32 to vector<8x128xf32>
    %292 = arith.addf %291, %290 : vector<8x128xf32>
    %293 = vector.broadcast %287 : f32 to vector<8x128xf32>
    %294 = arith.mulf %293, %2 : vector<8x128xf32>
    %295 = arith.addf %292, %294 : vector<8x128xf32>
    %296 = vector.broadcast %286 : f32 to vector<8x128xf32>
    %297 = arith.mulf %296, %1 : vector<8x128xf32>
    %298 = vector.broadcast %284 : f32 to vector<8x128xf32>
    %299 = arith.addf %298, %297 : vector<8x128xf32>
    %300 = vector.broadcast %288 : f32 to vector<8x128xf32>
    %301 = arith.mulf %300, %2 : vector<8x128xf32>
    %302 = arith.addf %299, %301 : vector<8x128xf32>
    %303 = arith.mulf %295, %295 : vector<8x128xf32>
    %304 = arith.mulf %302, %302 : vector<8x128xf32>
    %305 = arith.addf %303, %304 : vector<8x128xf32>
    %cst_41 = arith.constant 1.000000e+00 : f32
    %306 = vector.broadcast %cst_41 : f32 to vector<8x128xf32>
    %307 = arith.subf %306, %305 : vector<8x128xf32>
    %c10_42 = arith.constant 10 : index
    %c0_43 = arith.constant 0 : index
    %c0_44 = arith.constant 0 : index
    %308 = vector.load %arg3[%c10_42, %c0_43, %c0_44] : memref<15x8x128xf32, #tpu.memory_space<vmem>>, vector<1x8x128xf32>
    %309 = vector.shape_cast %308 : vector<1x8x128xf32> to vector<8x128xf32>
    %310 = vector.shape_cast %307 : vector<8x128xf32> to vector<1x8x128xf32>
    tpu.vector_store %arg3[%c10_42, %c0_43, %c0_44], %310 {strides = array<i32>} : memref<15x8x128xf32, #tpu.memory_space<vmem>>, vector<1x8x128xf32>,
    %c66 = arith.constant 66 : index
    %311 = memref.load %arg1[%c66] : memref<90xf32, #tpu.memory_space<smem>>
    %c67 = arith.constant 67 : index
    %312 = memref.load %arg1[%c67] : memref<90xf32, #tpu.memory_space<smem>>
    %c68 = arith.constant 68 : index
    %313 = memref.load %arg1[%c68] : memref<90xf32, #tpu.memory_space<smem>>
    %c69 = arith.constant 69 : index
    %314 = memref.load %arg1[%c69] : memref<90xf32, #tpu.memory_space<smem>>
    %c70 = arith.constant 70 : index
    %315 = memref.load %arg1[%c70] : memref<90xf32, #tpu.memory_space<smem>>
    %c71 = arith.constant 71 : index
    %316 = memref.load %arg1[%c71] : memref<90xf32, #tpu.memory_space<smem>>
    %317 = vector.broadcast %313 : f32 to vector<8x128xf32>
    %318 = arith.mulf %317, %1 : vector<8x128xf32>
    %319 = vector.broadcast %311 : f32 to vector<8x128xf32>
    %320 = arith.addf %319, %318 : vector<8x128xf32>
    %321 = vector.broadcast %315 : f32 to vector<8x128xf32>
    %322 = arith.mulf %321, %2 : vector<8x128xf32>
    %323 = arith.addf %320, %322 : vector<8x128xf32>
    %324 = vector.broadcast %314 : f32 to vector<8x128xf32>
    %325 = arith.mulf %324, %1 : vector<8x128xf32>
    %326 = vector.broadcast %312 : f32 to vector<8x128xf32>
    %327 = arith.addf %326, %325 : vector<8x128xf32>
    %328 = vector.broadcast %316 : f32 to vector<8x128xf32>
    %329 = arith.mulf %328, %2 : vector<8x128xf32>
    %330 = arith.addf %327, %329 : vector<8x128xf32>
    %331 = arith.mulf %323, %323 : vector<8x128xf32>
    %332 = arith.mulf %330, %330 : vector<8x128xf32>
    %333 = arith.addf %331, %332 : vector<8x128xf32>
    %cst_45 = arith.constant 1.000000e+00 : f32
    %334 = vector.broadcast %cst_45 : f32 to vector<8x128xf32>
    %335 = arith.subf %334, %333 : vector<8x128xf32>
    %c11_46 = arith.constant 11 : index
    %c0_47 = arith.constant 0 : index
    %c0_48 = arith.constant 0 : index
    %336 = vector.load %arg3[%c11_46, %c0_47, %c0_48] : memref<15x8x128xf32, #tpu.memory_space<vmem>>, vector<1x8x128xf32>
    %337 = vector.shape_cast %336 : vector<1x8x128xf32> to vector<8x128xf32>
    %338 = vector.shape_cast %335 : vector<8x128xf32> to vector<1x8x128xf32>
    tpu.vector_store %arg3[%c11_46, %c0_47, %c0_48], %338 {strides = array<i32>} : memref<15x8x128xf32, #tpu.memory_space<vmem>>, vector<1x8x128xf32>,
    %c72 = arith.constant 72 : index
    %339 = memref.load %arg1[%c72] : memref<90xf32, #tpu.memory_space<smem>>
    %c73 = arith.constant 73 : index
    %340 = memref.load %arg1[%c73] : memref<90xf32, #tpu.memory_space<smem>>
    %c74 = arith.constant 74 : index
    %341 = memref.load %arg1[%c74] : memref<90xf32, #tpu.memory_space<smem>>
    %c75 = arith.constant 75 : index
    %342 = memref.load %arg1[%c75] : memref<90xf32, #tpu.memory_space<smem>>
    %c76 = arith.constant 76 : index
    %343 = memref.load %arg1[%c76] : memref<90xf32, #tpu.memory_space<smem>>
    %c77 = arith.constant 77 : index
    %344 = memref.load %arg1[%c77] : memref<90xf32, #tpu.memory_space<smem>>
    %345 = vector.broadcast %341 : f32 to vector<8x128xf32>
    %346 = arith.mulf %345, %1 : vector<8x128xf32>
    %347 = vector.broadcast %339 : f32 to vector<8x128xf32>
    %348 = arith.addf %347, %346 : vector<8x128xf32>
    %349 = vector.broadcast %343 : f32 to vector<8x128xf32>
    %350 = arith.mulf %349, %2 : vector<8x128xf32>
    %351 = arith.addf %348, %350 : vector<8x128xf32>
    %352 = vector.broadcast %342 : f32 to vector<8x128xf32>
    %353 = arith.mulf %352, %1 : vector<8x128xf32>
    %354 = vector.broadcast %340 : f32 to vector<8x128xf32>
    %355 = arith.addf %354, %353 : vector<8x128xf32>
    %356 = vector.broadcast %344 : f32 to vector<8x128xf32>
    %357 = arith.mulf %356, %2 : vector<8x128xf32>
    %358 = arith.addf %355, %357 : vector<8x128xf32>
    %359 = arith.mulf %351, %351 : vector<8x128xf32>
    %360 = arith.mulf %358, %358 : vector<8x128xf32>
    %361 = arith.addf %359, %360 : vector<8x128xf32>
    %cst_49 = arith.constant 1.000000e+00 : f32
    %362 = vector.broadcast %cst_49 : f32 to vector<8x128xf32>
    %363 = arith.subf %362, %361 : vector<8x128xf32>
    %c12_50 = arith.constant 12 : index
    %c0_51 = arith.constant 0 : index
    %c0_52 = arith.constant 0 : index
    %364 = vector.load %arg3[%c12_50, %c0_51, %c0_52] : memref<15x8x128xf32, #tpu.memory_space<vmem>>, vector<1x8x128xf32>
    %365 = vector.shape_cast %364 : vector<1x8x128xf32> to vector<8x128xf32>
    %366 = vector.shape_cast %363 : vector<8x128xf32> to vector<1x8x128xf32>
    tpu.vector_store %arg3[%c12_50, %c0_51, %c0_52], %366 {strides = array<i32>} : memref<15x8x128xf32, #tpu.memory_space<vmem>>, vector<1x8x128xf32>,
    %c78 = arith.constant 78 : index
    %367 = memref.load %arg1[%c78] : memref<90xf32, #tpu.memory_space<smem>>
    %c79 = arith.constant 79 : index
    %368 = memref.load %arg1[%c79] : memref<90xf32, #tpu.memory_space<smem>>
    %c80 = arith.constant 80 : index
    %369 = memref.load %arg1[%c80] : memref<90xf32, #tpu.memory_space<smem>>
    %c81 = arith.constant 81 : index
    %370 = memref.load %arg1[%c81] : memref<90xf32, #tpu.memory_space<smem>>
    %c82 = arith.constant 82 : index
    %371 = memref.load %arg1[%c82] : memref<90xf32, #tpu.memory_space<smem>>
    %c83 = arith.constant 83 : index
    %372 = memref.load %arg1[%c83] : memref<90xf32, #tpu.memory_space<smem>>
    %373 = vector.broadcast %369 : f32 to vector<8x128xf32>
    %374 = arith.mulf %373, %1 : vector<8x128xf32>
    %375 = vector.broadcast %367 : f32 to vector<8x128xf32>
    %376 = arith.addf %375, %374 : vector<8x128xf32>
    %377 = vector.broadcast %371 : f32 to vector<8x128xf32>
    %378 = arith.mulf %377, %2 : vector<8x128xf32>
    %379 = arith.addf %376, %378 : vector<8x128xf32>
    %380 = vector.broadcast %370 : f32 to vector<8x128xf32>
    %381 = arith.mulf %380, %1 : vector<8x128xf32>
    %382 = vector.broadcast %368 : f32 to vector<8x128xf32>
    %383 = arith.addf %382, %381 : vector<8x128xf32>
    %384 = vector.broadcast %372 : f32 to vector<8x128xf32>
    %385 = arith.mulf %384, %2 : vector<8x128xf32>
    %386 = arith.addf %383, %385 : vector<8x128xf32>
    %387 = arith.mulf %379, %379 : vector<8x128xf32>
    %388 = arith.mulf %386, %386 : vector<8x128xf32>
    %389 = arith.addf %387, %388 : vector<8x128xf32>
    %cst_53 = arith.constant 1.000000e+00 : f32
    %390 = vector.broadcast %cst_53 : f32 to vector<8x128xf32>
    %391 = arith.subf %390, %389 : vector<8x128xf32>
    %c13_54 = arith.constant 13 : index
    %c0_55 = arith.constant 0 : index
    %c0_56 = arith.constant 0 : index
    %392 = vector.load %arg3[%c13_54, %c0_55, %c0_56] : memref<15x8x128xf32, #tpu.memory_space<vmem>>, vector<1x8x128xf32>
    %393 = vector.shape_cast %392 : vector<1x8x128xf32> to vector<8x128xf32>
    %394 = vector.shape_cast %391 : vector<8x128xf32> to vector<1x8x128xf32>
    tpu.vector_store %arg3[%c13_54, %c0_55, %c0_56], %394 {strides = array<i32>} : memref<15x8x128xf32, #tpu.memory_space<vmem>>, vector<1x8x128xf32>,
    %c84 = arith.constant 84 : index
    %395 = memref.load %arg1[%c84] : memref<90xf32, #tpu.memory_space<smem>>
    %c85 = arith.constant 85 : index
    %396 = memref.load %arg1[%c85] : memref<90xf32, #tpu.memory_space<smem>>
    %c86 = arith.constant 86 : index
    %397 = memref.load %arg1[%c86] : memref<90xf32, #tpu.memory_space<smem>>
    %c87 = arith.constant 87 : index
    %398 = memref.load %arg1[%c87] : memref<90xf32, #tpu.memory_space<smem>>
    %c88 = arith.constant 88 : index
    %399 = memref.load %arg1[%c88] : memref<90xf32, #tpu.memory_space<smem>>
    %c89 = arith.constant 89 : index
    %400 = memref.load %arg1[%c89] : memref<90xf32, #tpu.memory_space<smem>>
    %401 = vector.broadcast %397 : f32 to vector<8x128xf32>
    %402 = arith.mulf %401, %1 : vector<8x128xf32>
    %403 = vector.broadcast %395 : f32 to vector<8x128xf32>
    %404 = arith.addf %403, %402 : vector<8x128xf32>
    %405 = vector.broadcast %399 : f32 to vector<8x128xf32>
    %406 = arith.mulf %405, %2 : vector<8x128xf32>
    %407 = arith.addf %404, %406 : vector<8x128xf32>
    %408 = vector.broadcast %398 : f32 to vector<8x128xf32>
    %409 = arith.mulf %408, %1 : vector<8x128xf32>
    %410 = vector.broadcast %396 : f32 to vector<8x128xf32>
    %411 = arith.addf %410, %409 : vector<8x128xf32>
    %412 = vector.broadcast %400 : f32 to vector<8x128xf32>
    %413 = arith.mulf %412, %2 : vector<8x128xf32>
    %414 = arith.addf %411, %413 : vector<8x128xf32>
    %415 = arith.mulf %407, %407 : vector<8x128xf32>
    %416 = arith.mulf %414, %414 : vector<8x128xf32>
    %417 = arith.addf %415, %416 : vector<8x128xf32>
    %cst_57 = arith.constant 1.000000e+00 : f32
    %418 = vector.broadcast %cst_57 : f32 to vector<8x128xf32>
    %419 = arith.subf %418, %417 : vector<8x128xf32>
    %c14_58 = arith.constant 14 : index
    %c0_59 = arith.constant 0 : index
    %c0_60 = arith.constant 0 : index
    %420 = vector.load %arg3[%c14_58, %c0_59, %c0_60] : memref<15x8x128xf32, #tpu.memory_space<vmem>>, vector<1x8x128xf32>
    %421 = vector.shape_cast %420 : vector<1x8x128xf32> to vector<8x128xf32>
    %422 = vector.shape_cast %419 : vector<8x128xf32> to vector<1x8x128xf32>
    tpu.vector_store %arg3[%c14_58, %c0_59, %c0_60], %422 {strides = array<i32>} : memref<15x8x128xf32, #tpu.memory_space<vmem>>, vector<1x8x128xf32>,
    return
  }
  func.func @transform_0(%arg0: i32) -> i32 {
    %c0_i32 = arith.constant 0 : i32
    %c0_i32_0 = arith.constant 0 : i32
    return %c0_i32 : i32
  }
  func.func @transform_1(%arg0: i32) -> (i32, i32) {
    %c0_i32 = arith.constant 0 : i32
    %c0_i32_0 = arith.constant 0 : i32
    return %arg0, %c0_i32 : i32, i32
  }
  func.func @transform_2(%arg0: i32) -> (i32, i32, i32) {
    %c0_i32 = arith.constant 0 : i32
    %c0_i32_0 = arith.constant 0 : i32
    %c0_i32_1 = arith.constant 0 : i32
    return %c0_i32, %arg0, %c0_i32_0 : i32, i32, i32
  }
}

</mosaic_0001>

<bundles_post_ra>
// kernel: tpu_custom_call.1
= control target key start
LH: loop header
LB: loop body
LE: loop exit
PB: predicated region body
PF: predicated region fallthrough
CT: control target
= control target key end

     0   :  { %s1930_s0 = inlined_call_operand.hbm [shape: f32[90], index: 0, kind: input, shape index: {}]   ;;  %s1931_s1 = inlined_call_operand.hbm [shape: f32[16,128], index: 1, kind: input, shape index: {}]   ;;  %s1932_s2 = inlined_call_operand.hbm [shape: f32[15,16,128], index: 2, kind: output, shape index: {}]  }
   0x1   :  { %2021 = sst [smem:[#allocation85_spill]] %s1930_s0 }
   0x2   :  { %2022 = sst [smem:[#allocation86_spill]] %s1931_s1 }
   0x3   :  { %2023 = sst [smem:[#allocation87_spill]] %s1932_s2 }
   0x4   :  { %7 = vsyncpa [#allocation5], 0 }
   0x5   :  { %8 = vsyncpa [#allocation3], 0 }
   0x6   :  { %10 = vsyncpa [#allocation3 + $0x1], 0 }
   0x7   :  { %11 = vsyncpa [#allocation4], 0 }
   0x8   :  { %13 = vsyncpa [#allocation4 + $0x1], 0  ;;  %s1200_s9 = smov 0   ;;  %s1202_s10 = smov 0  }
   0x9   :  { %s1204_s11 = smov 0   ;;  %s1206_s12 = smov 0  }
   0xa LB: > { %2024 = sst [smem:[#allocation11_spill]] %s1159_s9  ;;  %s1221_s13 = sadd.s32 4294967295, %s1171_s12   ;;  %s1171_s12 = sphi %s1206_s12, %s2245_s12   ;;  %s1167_s11 = sphi %s1204_s11, %s2248_s11   ;;  %s1163_s10 = sphi %s1202_s10, %s2247_s10   ;;  %s1159_s9 = sphi %s1200_s9, %s2246_s9  }
   0xb   : > { %2025 = sst [smem:[#allocation12_spill]] %s1163_s10  ;;  %s866_s14 = sadd.s32 4294967294, %s1171_s12  }
   0xc   : > { %2026 = sst [smem:[#allocation13_spill]] %s1167_s11  ;;  %p60_p0 = scmp.ne.s32.totalorder %s1163_s10, %s1159_s9 }
   0xd   : > { %2027 = sst [smem:[#allocation14_spill]] %s1171_s12  ;;  %p1933_p1 = scmp.eq.s32.totalorder %s1221_s13, 0 }
   0xe   : > { %2028 = sst [smem:[#allocation15_spill]] %s1221_s13  ;;  %p84_p2 = scmp.eq.s32.totalorder %s1221_s13, 1 }
   0xf   : > { %p90_p3 = scmp.eq.s32.totalorder %s866_s14, 1  ;;  %p1230_p4 = por %p1933_p1, %p60_p0 }
  0x10   : > { %p867_p5 = scmp.ge.s32.totalorder %s1171_s12, 1  ;;  %p97_p7 = scmp.lt.s32.totalorder %s1171_s12, 3 }
  0x11   : > { %s2029_s15 = scalar_select %p1230_p4, 1, 0 }
  0x12   : > { %p1235_p6 = por %p90_p3, %p60_p0  ;;  %p1240_p8 = pnand %p867_p5, %p97_p7 }
  0x13   : > { %s1246_s18 = sadd.s32 1, %s1171_s12   ;;  %s47_s20 = sadd.s32 1, %s1167_s11 }
  0x14   : > { %s2030_s16 = scalar_select %p1235_p6, 1, 0 }
  0x15   : > { %s2032_s17 = scalar_select %p1240_p8, 1, 0 }
  0x16   : > { %2031 = sst [smem:[#allocation16_spill]] %s2030_s16  ;;  %p1002_p10 = pneg %p1240_p8 }
  0x17   : > { %2033 = sst [smem:[#allocation17_spill]] %s1246_s18  ;;  %s44_s19 = ssub.s32 %s1171_s12, %s1246_s18 }
  0x18   : > { %p1003_p11 = pnand %p1002_p10, %p1933_p1  ;;  %p45_p12 = scmp.eq.s32.totalorder %s44_s19, 0 }
  0x19   : > { %p54_p13 = scmp.ne.s32.totalorder %s1167_s11, %s1163_s10  ;;  %p55_p0 = scmp.eq.s32.totalorder %s1171_s12, 0 }
  0x1a   : > { %p1015_p3 = scmp.lt.s32.totalorder %s1171_s12, 2  ;;  %s1173_s21 = smov [#allocation2]  }
  0x1b   : > { %s2034_s0 = sld [smem:[#allocation85_spill]]  ;;  %p56_p5 = por %p55_p0, %p54_p13 }
  0x1c   : > { %s1263_s24 = scalar_select %p45_p12, %s1167_s11, %s47_s20  }
  0x1d   : > { %p1267_p7 = por %p84_p2, %p54_p13  ;;  %s119_s26 = sand.u32 1, %s1167_s11  }
  0x1e   : > { %2035 = sst [smem:[#allocation18_spill]] %s1263_s24  ;;  %s871_s27 = sshll.u32 %s1171_s12, 7 }
  0x1f   : > { %s2036_s25 = scalar_select %p1267_p7, 1, 0 }
  0x20   : > { %s870_s28 = sshll.u32 %s119_s26, 3  ;;  %s2038_s1 = sld [smem:[#allocation86_spill]] }
  0x21   : > { %1005 = dma.hbm_to_smem (!%p1003_p11), %s2034_s0, 16, %s1173_s21, [#allocation5]  }
  0x22   : > { %2037 = sst [smem:[#allocation19_spill]] %s2036_s25  ;;  %s123_s4 = scalar_lea.vmem [#allocation6], %s870_s28 }
  0x23   : > { %s130_s5 = sshll.u32 %s123_s4, 4  ;;  %p1278_p10 = pnand %p1015_p3, %p56_p5  ;;  %s131_s5 = int_to_ptr.vmem [resolvable:$true] %s130_s5 }
  0x24   : > { %s120_s7 = scalar_lea.sflag [#allocation3], %s119_s26 }
  0x25   : > { %p1077_p11 = pneg %p1278_p10 }
  0x26   : > { %s1276_s3 = scalar_lea.hbm %s2038_s1, %s871_s27  ;;  %s1080_s20 = scalar_lea.hbm %s2038_s1, 256 }
  0x27   : > { %s1075_s8 = scalar_lea.hbm %s1276_s3, 128  ;;  %p1081_p0 = scmp.lt.s32.totalorder %s1276_s3, %s2038_s1 }
  0x28   : > { %p1076_p2 = scmp.ne.s32.totalorder %s1276_s3, %s1075_s8  ;;  %p1082_p3 = scmp.lt.s32.totalorder %s1080_s20, %s1075_s8 }
  0x2a   : > { %p1078_p12 = pnand %p1077_p11, %p1076_p2  ;;  %p1083_p5 = por %p1082_p3, %p1081_p0 }
  0x2c   : > { %p1079_p13 = pneg %p1078_p12 }
  0x2e   : > { %p1084_p9 = pnand %p1083_p5, %p1079_p13 }
  0x30   : > { %1087 = shalt.err (!%p1084_p9)
}
  0x31   : > { %s1088_s23 = scalar_lea.vmem %s131_s5, 128  ;;  %s1174_s26 = smov [#allocation6]  }
  0x32   : > { %p1089_p1 = scmp.ne.s32.totalorder %s131_s5, %s1088_s23  ;;  %s1093_s27 = sshll.u32 %s1174_s26, 4  ;;  %s1094_s27 = int_to_ptr.vmem [resolvable:$false] %s1093_s27 }
  0x33   : > { %s1095_s28 = scalar_lea.vmem %s1094_s27, 256  ;;  %p1096_p2 = scmp.lt.s32.totalorder %s131_s5, %s1094_s27 }
  0x34   : > { %p1091_p6 = pnand %p1089_p1, %p1077_p11  ;;  %p1097_p12 = scmp.lt.s32.totalorder %s1095_s28, %s1088_s23 }
  0x36   : > { %p1092_p7 = pneg %p1091_p6  ;;  %p1098_p4 = por %p1097_p12, %p1096_p2 }
  0x38   : > { %p1099_p8 = pnand %p1098_p4, %p1092_p7 }
  0x3a   : > { %1102 = shalt.err (!%p1099_p8)
}
  0x3b   : > { %1009 = dma.hbm_to_vmem [thread:$0]  (!%p1278_p10), %s1276_s3, 128, %s131_s5, %s120_s7  }
  0x3c   : > { %p2040_p13 = scmp.ne.s32.totalorder %s2032_s17, 0 }
  0x3e   : > { %139 = sbr.rel (%p2040_p13) target bundleno = 311 (0x137), region = 28 }
  0x43   : > { %p2041_p9 = scmp.eq.s32.totalorder %s1221_s13, 0 }
  0x45   : > { %1146 = dma.done.wait (%p2041_p9), [#allocation5], 16   ;;  %p2042_p1 = pmov %p2041_p9 }
  0x46   : > { %s1303_s29 = sand.u32 1, %s1163_s10   ;;  %p2044_p4 = scmp.ne.s32.totalorder %s2029_s15, 0 }
  0x47   : > { %1148 = vsyncadd (%p2042_p1), [#allocation5], 4294967280  ;;  %2043 = sst [smem:[#allocation20_spill]] %s1303_s29  ;;  %s874_s30 = sshll.u32 %s1303_s29, 3 }
  0x48   : > { %s146_s4 = scalar_lea.sflag [#allocation3], %s1303_s29  ;;  %s149_s6 = scalar_lea.vmem [#allocation6], %s874_s30 }
  0x49   : > { %1150 = dma.done.wait (%p2044_p4), %s146_s4, 128  }
  0x4a   : > { %1152 = vsyncadd (%p2044_p4), %s146_s4, 4294967168 }
  0x4b   : > { %154 = sfence }
  0x4c   : > { %v1311_v0 = vld [vmem:[%s149_s6] sm:$0xff]  ;;  %s1315_s17 = sld [smem:[#allocation2]]  ;;  %v1175_v12 = vmov 683565275   ;;  %v1176_v14 = vmov 2475754826  }
  0x4d   : > { %v175_v1 = vand.u32 2139095040, %v1311_v0  ;;  %v172_v3 = vand.u32 2147483647, %v1311_v0  ;;  %s1317_s3 = sld [smem:[#allocation2 + $0x1]]  ;;  %v1177_v16 = vmov 2131351028   ;;  %vm264_vm15 = vweird.f32 %v1311_v0 }
  0x4e   : > { %s1319_s5 = sld [smem:[#allocation2 + $0x2]]  ;;  %v1178_v18 = vmov 2102212464   ;;  %v1179_v20 = vmov 920167782   ;;  %vm174_vm7 = vcmp.lt.s32.totalorder %v1311_v0, 0 }
  0x4f   : > { %v176_v2 = vshrl.u32 %v175_v1, 23  ;;  %s1321_s7 = sld [smem:[#allocation2 + $0x3]]  ;;  %v179_v6 = vand.u32 8388607, %v172_v3  ;;  %v1180_v27 = vmov 1326507024  }
  0x50   : > { %s1325_s15 = sld [smem:[#allocation2 + $0x4]]  ;;  %vm1450_vm8 = vcmp.le.f32.partialorder %v172_v3, 0.7853982 }
  0x51   : > { %v875_v4 = vadd.s32 4294967169, %v176_v2  ;;  %s1327_s8 = sld [smem:[#allocation2 + $0x5]]  ;;  %v180_v9 = vor.u32 8388608, %v179_v6 }
  0x52   : > { %2045 = sst [smem:[#allocation21_spill]] %s1315_s17 }
  0x53   : > { %2046 = sst [smem:[#allocation22_spill]] %s1317_s3  ;;  %v182_v5 = vadd.s32 1, %v875_v4  ;;  %v220_v29 = vshll.u32 %v180_v9, 8  ;;  %v394_v3 = vstv %s1317_s3 }
  0x54   : > { %2047 = sst [smem:[#allocation23_spill]] %s1319_s5 }
  0x55   : > { %2048 = sst [smem:[#allocation24_spill]] %s1321_s7  ;;  %vm183_vm0 = vcmp.gt.s32.totalorder %v182_v5, 0 }
  0x56   : > { %2049 = sst [smem:[#allocation25_spill]] %s1325_s15  ;;  %v184_v7 = vsel %vm183_vm0, %v182_v5, 0 }
  0x57   : > { %2050 = sst [smem:[#allocation26_spill]] %s1327_s8  ;;  %v186_v8 = vand.u32 31, %v184_v7  ;;  %v185_v10 = vshrl.u32 %v184_v7, 5 }
  0x58   : > { %s1329_s14 = sld [smem:[#allocation2 + $0x6]] }
  0x59   : > { %s1331_s19 = sld [smem:[#allocation2 + $0x7]]  ;;  %v187_v11 = vsub.s32 32, %v186_v8  ;;  %v189_v13 = vshll.u32 %v1175_v12, %v186_v8  ;;  %v192_v15 = vshll.u32 %v1176_v14, %v186_v8  ;;  %v195_v17 = vshll.u32 %v1177_v16, %v186_v8 }
  0x5a   : > { %s1333_s20 = sld [smem:[#allocation2 + $0x8]]  ;;  %v198_v19 = vshll.u32 %v1178_v18, %v186_v8  ;;  %v201_v21 = vshll.u32 %v1179_v20, %v186_v8  ;;  %vm204_vm1 = vcmp.lt.s32.totalorder %v185_v10, 1  ;;  %vm207_vm2 = vcmp.lt.s32.totalorder %v185_v10, 4 }
  0x5b   : > { %s1335_s21 = sld [smem:[#allocation2 + $0x9]]  ;;  %v188_v22 = vshrl.u32 %v1175_v12, %v187_v11  ;;  %v190_v23 = vshrl.u32 %v1176_v14, %v187_v11  ;;  %v193_v24 = vshrl.u32 %v1177_v16, %v187_v11  ;;  %v196_v25 = vshrl.u32 %v1178_v18, %v187_v11 }
  0x5c   : > { %s1337_s22 = sld [smem:[#allocation2 + $0xa]]  ;;  %v199_v26 = vshrl.u32 %v1179_v20, %v187_v11  ;;  %v202_v28 = vshrl.u32 %v1180_v27, %v187_v11  ;;  %vm205_vm3 = vcmp.lt.s32.totalorder %v185_v10, 2  ;;  %vm206_vm4 = vcmp.lt.s32.totalorder %v185_v10, 3 }
  0x5d   : > { %s1339_s23 = sld [smem:[#allocation2 + $0xb]]  ;;  %v191_v30 = vor.u32 %v190_v23, %v189_v13  ;;  %v194_v31 = vor.u32 %v193_v24, %v192_v15  ;;  %v197_v32 = vor.u32 %v196_v25, %v195_v17  ;;  %v387_v18 = vstv %s1315_s17 }
  0x5e   : > { %2051 = sst [smem:[#allocation27_spill]] %s1329_s14  ;;  %v200_v33 = vor.u32 %v199_v26, %v198_v19  ;;  %v203_v34 = vor.u32 %v202_v28, %v201_v21  ;;  %v385_v20 = vstv %s1319_s5  ;;  %v389_v21 = vstv %s1325_s15 }
  0x5f   : > { %2052 = sst [smem:[#allocation28_spill]] %s1331_s19  ;;  %v208_v35 = vsel %vm204_vm1, %v188_v22, %v191_v30  ;;  %v209_v36 = vsel %vm207_vm2, %v197_v32, 2102212464  ;;  %v212_v37 = vsel %vm204_vm1, %v191_v30, %v194_v31  ;;  %v216_v38 = vsel %vm204_vm1, %v194_v31, %v197_v32 }
  0x60   : > { %2053 = sst [smem:[#allocation29_spill]] %s1333_s20  ;;  %v210_v39 = vsel %vm206_vm4, %v194_v31, %v209_v36  ;;  %v213_v40 = vsel %vm207_vm2, %v200_v33, 920167782  ;;  %v217_v41 = vsel %vm207_vm2, %v203_v34, 1326507024  ;;  %v392_v22 = vstv %s1321_s7 }
  0x61   : > { %2054 = sst [smem:[#allocation30_spill]] %s1335_s21  ;;  %v214_v42 = vsel %vm206_vm4, %v197_v32, %v213_v40  ;;  %v218_v43 = vsel %vm206_vm4, %v200_v33, %v217_v41  ;;  %v211_v44 = vsel %vm205_vm3, %v208_v35, %v210_v39  ;;  %v396_v23 = vstv %s1327_s8 }
  0x62   : > { %2055 = sst [smem:[#allocation31_spill]] %s1337_s22  ;;  %v215_v45 = vsel %vm205_vm3, %v212_v37, %v214_v42  ;;  %v219_v46 = vsel %vm205_vm3, %v216_v38, %v218_v43  ;;  %v227_v51 = vmul.u32 %v220_v29, %v211_v44  ;;  %v410_v24 = vstv %s1333_s20 }
  0x63   : > { %2056 = sst [smem:[#allocation32_spill]] %s1339_s23  ;;  %v1361_v47 = vmul.u32.u64.low %v220_v29, %v219_v46  ;;  %v1362_v48 = vmul.u32.u64.high %v220_v29, %v219_v46, %v1361_v47  ;;  %v1364_v49 = vmul.u32.u64.low %v220_v29, %v215_v45  ;;  %v1365_v50 = vmul.u32.u64.high %v220_v29, %v215_v45, %v1364_v49 }
  0x64   : > { %s1341_s26 = sld [smem:[#allocation2 + $0xc]]  ;;  %v412_v25 = vstv %s1329_s14  ;;  %v414_v28 = vstv %s1337_s22  ;;  %v417_v29 = vstv %s1335_s21  ;;  %v419_v31 = vstv %s1331_s19 }
  0x65   : > { %s1343_s27 = sld [smem:[#allocation2 + $0xd]]  ;;  %vm229_vm5 = vc.u32 %v1362_v48, %v1364_v49  ;;  %v230_v52 = vadd.s32 1, %v1365_v50  ;;  %v228_v63 = vadd.s32 %v1364_v49, %v1362_v48  ;;  %v421_v32 = vstv %s1339_s23 }
  0x66   : > { %s1345_s28 = sld [smem:[#allocation2 + $0xe]] }
  0x67   : > { %s1350_s30 = sld [smem:[#allocation2 + $0xf]]  ;;  %v231_v53 = vsel %vm229_vm5, %v230_v52, %v1365_v50 }
  0x68   : > { %s1352_s4 = sld [smem:[#allocation2 + $0x10]]  ;;  %v232_v54 = vadd.s32 %v231_v53, %v227_v51 }
  0x69   : > { %s1354_s6 = sld [smem:[#allocation2 + $0x11]] }
  0x6a   : > { %2057 = sst [smem:[#allocation33_spill]] %s1341_s26  ;;  %v233_v55 = vadd.s32 536870912, %v232_v54  ;;  %v438_v34 = vstv %s1341_s26 }
  0x6b   : > { %2058 = sst [smem:[#allocation34_spill]] %s1343_s27  ;;  %v445_v36 = vstv %s1343_s27 }
  0x6c   : > { %2059 = sst [smem:[#allocation35_spill]] %s1345_s28  ;;  %v234_v56 = vshrl.u32 %v233_v55, 30  ;;  %v436_v33 = vstv %s1345_s28 }
  0x6d   : > { %2060 = sst [smem:[#allocation36_spill]] %s1350_s30  ;;  %v443_v35 = vstv %s1350_s30 }
  0x6e   : > { %2061 = sst [smem:[#allocation37_spill]] %s1352_s4  ;;  %v235_v57 = vshll.u32 %v234_v56, 30  ;;  %v258_v10 = vsub.s32 4, %v234_v56  ;;  %v440_v38 = vstv %s1352_s4 }
  0x6f   : > { %2062 = sst [smem:[#allocation38_spill]] %s1354_s6  ;;  %v447_v39 = vstv %s1354_s6 }
  0x70   : > { %s1359_s0 = sld [smem:[#allocation2 + $0x12]]  ;;  %v236_v58 = vsub.s32 %v232_v54, %v235_v57  ;;  %v259_v14 = vsel %vm174_vm7, %v258_v10, %v234_v56 }
  0x71   : > { %s1367_s1 = sld [smem:[#allocation2 + $0x13]]  ;;  %v261_v17 = vsel %vm1450_vm8, 0, %v259_v14 }
  0x72   : > { %s1369_s24 = sld [smem:[#allocation2 + $0x14]]  ;;  %v238_v59 = vsub.s32 0, %v236_v58  ;;  %v368_v27 = vadd.s32 3, %v261_v17  ;;  %v1491_v37 = vand.u32 3, %v261_v17 }
  0x73   : > { %s1371_s11 = sld [smem:[#allocation2 + $0x15]] }
  0x74   : > { %s1373_s10 = sld [smem:[#allocation2 + $0x16]]  ;;  %v876_v60 = vmin.u32 %v238_v59, %v236_v58  ;;  %v1497_v40 = vand.u32 3, %v368_v27  ;;  %vm270_vm9 = vcmp.eq.s32.totalorder %v1491_v37, 2  ;;  %vm267_vm10 = vcmp.eq.s32.totalorder %v1491_v37, 0 }
  0x75   : > { %s1377_s18 = sld [smem:[#allocation2 + $0x17]]  ;;  %vm266_vm12 = vcmp.lt.s32.totalorder %v1491_v37, 2 }
  0x76   : > { %2063 = sst [smem:[#allocation39_spill]] %s1359_s0  ;;  %v240_v61 = vclz %v876_v60  ;;  %v464_v42 = vstv %s1359_s0  ;;  %vm371_vm11 = vcmp.eq.s32.totalorder %v1497_v40, 0  ;;  %vm370_vm13 = vcmp.lt.s32.totalorder %v1497_v40, 2 }
  0x77   : > { %2064 = sst [smem:[#allocation40_spill]] %s1367_s1  ;;  %v471_v43 = vstv %s1367_s1  ;;  %vm374_vm14 = vcmp.eq.s32.totalorder %v1497_v40, 2 }
  0x78   : > { %2065 = sst [smem:[#allocation41_spill]] %s1369_s24  ;;  %v877_v62 = vadd.s32 4294967294, %v240_v61  ;;  %v462_v41 = vstv %s1369_s24 }
  0x79   : > { %2066 = sst [smem:[#allocation42_spill]] %s1371_s11 }
  0x7a   : > { %2067 = sst [smem:[#allocation43_spill]] %s1373_s10  ;;  %vm878_vm6 = vcmp.lt.s32.totalorder %v877_v62, 0  ;;  %v466_v44 = vstv %s1373_s10 }
  0x7b   : > { %2068 = sst [smem:[#allocation44_spill]] %s1377_s18  ;;  %v243_v1 = vsel %vm878_vm6, 0, %v877_v62 }
  0x7c   : > { %s1379_s12 = sld [smem:[#allocation2 + $0x18]]  ;;  %v244_v2 = vsub.s32 32, %v243_v1  ;;  %v245_v4 = vshll.u32 %v236_v58, %v243_v1  ;;  %v248_v5 = vsub.s32 4294967266, %v243_v1 }
  0x7d   : > { %s1382_s16 = sld [smem:[#allocation2 + $0x19]] }
  0x7e   : > { %s1384_s9 = sld [smem:[#allocation2 + $0x1a]]  ;;  %v246_v6 = vshrl.u32 %v228_v63, %v244_v2  ;;  %v249_v7 = vadd.s32 127, %v248_v5 }
  0x7f   : > { %s1386_s2 = sld [smem:[#allocation2 + $0x1b]] }
  0x80   : > { %s1388_s25 = sld [smem:[#allocation2 + $0x1c]]  ;;  %v247_v8 = vor.u32 %v246_v6, %v245_v4  ;;  %v250_v9 = vshll.u32 %v249_v7, 23 }
  0x81   : > { %s1390_s13 = sld [smem:[#allocation2 + $0x1d]] }
  0x82   : > { %2069 = sst [smem:[#allocation45_spill]] %s1379_s12  ;;  %v251_v11 = vor.u32 4788187, %v250_v9  ;;  %v254_v12 = vcvt.s32.f32 %v247_v8 }
  0x83   : > { %2070 = sst [smem:[#allocation46_spill]] %s1382_s16 }
  0x84   : > { %2071 = sst [smem:[#allocation47_spill]] %s1384_s9  ;;  %v252_v13 = vand.u32 2147483647, %v251_v11 }
  0x85   : > { %2072 = sst [smem:[#allocation48_spill]] %s1386_s2 }
  0x86   : > { %2073 = sst [smem:[#allocation49_spill]] %s1388_s25  ;;  %v255_v16 = vmul.f32 %v254_v12, %v252_v13 }
  0x87   : > { %2074 = sst [smem:[#allocation50_spill]] %s1390_s13 }
  0x88   : > { %s1392_s29 = sld [smem:[#allocation2 + $0x1e]]  ;;  %v256_v19 = vxor.u32 2147483648, %v255_v16 }
  0x89   : > { %s1394_s18 = sld [smem:[#allocation2 + $0x1f]] }
  0x8a   : > { %s1396_s12 = sld [smem:[#allocation2 + $0x20]]  ;;  %v257_v26 = vsel %vm174_vm7, %v256_v19, %v255_v16 }
  0x8b   : > { %s1398_s11 = sld [smem:[#allocation2 + $0x21]]  ;;  %v260_v30 = vsel %vm1450_vm8, %v1311_v0, %v257_v26 }
  0x8c   : > { %s1400_s16 = sld [smem:[#allocation2 + $0x22]]  ;;  %1060 = vcosq.f32 %v260_v30 }
  0x8d   : > { %s1402_s9 = sld [smem:[#allocation2 + $0x23]]  ;;  %1062 = vsinq.f32 %v260_v30 }
  0x8e   : > { %2075 = sst [smem:[#allocation51_spill]] %s1392_s29 }
  0x8f   : > { %2076 = sst [smem:[#allocation52_spill]] %s1394_s18 }
  0x90   : > { %2077 = sst [smem:[#allocation53_spill]] %s1396_s12 }
  0x91   : > { %2078 = sst [smem:[#allocation54_spill]] %s1398_s11 }
  0x92   : > { %2079 = sst [smem:[#allocation55_spill]] %s1400_s16 }
  0x93   : > { %2080 = sst [smem:[#allocation56_spill]] %s1402_s9  ;;  %v525_v58 = vstv %s1402_s9 }
  0x94   : > { %s1404_s2 = sld [smem:[#allocation2 + $0x24]] }
  0x95   : > { %s1406_s25 = sld [smem:[#allocation2 + $0x25]] }
  0x96   : > { %s1408_s13 = sld [smem:[#allocation2 + $0x26]] }
  0x97   : > { %s1410_s29 = sld [smem:[#allocation2 + $0x27]] }
  0x98   : > { %s1412_s18 = sld [smem:[#allocation2 + $0x28]] }
  0x99   : > { %s1414_s12 = sld [smem:[#allocation2 + $0x29]]  ;;  %v1061_v26 = vpop.eup %1060 }
  0x9a   : > { %2081 = sst [smem:[#allocation57_spill]] %s1404_s2  ;;  %v1063_v14 = vpop.eup %1062  ;;  %v271_v16 = vxor.u32 2147483648, %v1061_v26 }
  0x9b   : > { %2082 = sst [smem:[#allocation58_spill]] %s1406_s25  ;;  %v268_v13 = vxor.u32 2147483648, %v1063_v14 }
  0x9c   : > { %s1416_s11 = sld [smem:[#allocation2 + $0x2a]]  ;;  %v540_v61 = vstv %s1408_s13  ;;  %v272_v9 = vsel %vm270_vm9, %v271_v16, %v1063_v14  ;;  %v376_v10 = vsel %vm374_vm14, %v271_v16, %v1063_v14 }
  0x9d   : > { %2083 = sst [smem:[#allocation59_spill]] %s1410_s29  ;;  %v269_v19 = vsel %vm267_vm10, %v1061_v26, %v268_v13  ;;  %v373_v27 = vsel %vm371_vm11, %v1061_v26, %v268_v13 }
  0x9e   : > { %2084 = sst [smem:[#allocation60_spill]] %s1412_s18  ;;  %v273_v14 = vsel %vm266_vm12, %v269_v19, %v272_v9  ;;  %v377_v16 = vsel %vm370_vm13, %v373_v27, %v376_v10 }
  0x9f   : > { %2085 = sst [smem:[#allocation61_spill]] %s1414_s12  ;;  %v551_v1 = vstv %s1414_s12  ;;  %v1600_v13 = vsel %vm264_vm15, nan, %v273_v14  ;;  %v1604_v26 = vsel %vm264_vm15, nan, %v377_v16 }
  0xa0   : > { %s1418_s16 = sld [smem:[#allocation2 + $0x2b]]  ;;  %v386_v9 = vmul.f32 %v385_v20, %v1600_v13  ;;  %v390_v10 = vmul.f32 %v389_v21, %v1604_v26  ;;  %v393_v19 = vmul.f32 %v392_v22, %v1600_v13  ;;  %v397_v0 = vmul.f32 %v396_v23, %v1604_v26 }
  0xa1   : > { %s1421_s2 = sld [smem:[#allocation2 + $0x2c]]  ;;  %v411_v27 = vmul.f32 %v410_v24, %v1600_v13  ;;  %v415_v14 = vmul.f32 %v414_v28, %v1604_v26  ;;  %v418_v20 = vmul.f32 %v417_v29, %v1600_v13  ;;  %v422_v21 = vmul.f32 %v421_v32, %v1604_v26 }
  0xa2   : > { %2086 = sst [smem:[#allocation62_spill]] %s1416_s11  ;;  %v388_v22 = vadd.f32 %v387_v18, %v386_v9  ;;  %v395_v23 = vadd.f32 %v394_v3, %v393_v19  ;;  %v437_v16 = vmul.f32 %v436_v33, %v1600_v13  ;;  %v441_v24 = vmul.f32 %v440_v38, %v1604_v26 }
  0xa3   : > { %s1423_s25 = sld [smem:[#allocation2 + $0x2d]]  ;;  %v413_v28 = vadd.f32 %v412_v25, %v411_v27  ;;  %v420_v29 = vadd.f32 %v419_v31, %v418_v20  ;;  %v444_v32 = vmul.f32 %v443_v35, %v1600_v13  ;;  %v448_v18 = vmul.f32 %v447_v39, %v1604_v26 }
  0xa4   : > { %s1425_s29 = sld [smem:[#allocation2 + $0x2e]]  ;;  %v391_v9 = vadd.f32 %v390_v10, %v388_v22  ;;  %v398_v3 = vadd.f32 %v397_v0, %v395_v23  ;;  %v439_v19 = vadd.f32 %v438_v34, %v437_v16  ;;  %v463_v33 = vmul.f32 %v462_v41, %v1600_v13 }
  0xa5   : > { %s1427_s18 = sld [smem:[#allocation2 + $0x2f]]  ;;  %v416_v25 = vadd.f32 %v415_v14, %v413_v28  ;;  %v423_v38 = vadd.f32 %v422_v21, %v420_v29  ;;  %v446_v31 = vadd.f32 %v445_v36, %v444_v32  ;;  %v467_v35 = vmul.f32 %v466_v44, %v1604_v26 }
  0xa6   : > { %2087 = sst [smem:[#allocation63_spill]] %s1418_s16  ;;  %v399_v39 = vmul.f32 %v391_v9, %v391_v9  ;;  %v400_v10 = vmul.f32 %v398_v3, %v398_v3  ;;  %v442_v27 = vadd.f32 %v441_v24, %v439_v19  ;;  %v465_v34 = vadd.f32 %v464_v42, %v463_v33 }
  0xa7   : > { %2088 = sst [smem:[#allocation64_spill]] %s1421_s2  ;;  %v424_v0 = vmul.f32 %v416_v25, %v416_v25  ;;  %v425_v41 = vmul.f32 %v423_v38, %v423_v38  ;;  %v449_v20 = vadd.f32 %v448_v18, %v446_v31 }
  0xa8   : > { %s1429_s11 = sld [smem:[#allocation2 + $0x30]]  ;;  %v401_v36 = vadd.f32 %v400_v10, %v399_v39  ;;  %v450_v21 = vmul.f32 %v442_v27, %v442_v27  ;;  %v468_v22 = vadd.f32 %v467_v35, %v465_v34  ;;  %v552_v34 = vmul.f32 %v551_v1, %v1604_v26 }
  0xa9   : > { %2089 = sst [smem:[#allocation65_spill]] %s1423_s25  ;;  %v426_v23 = vadd.f32 %v425_v41, %v424_v0  ;;  %v451_v16 = vmul.f32 %v449_v20, %v449_v20 }
  0xaa   : > { %2090 = sst [smem:[#allocation66_spill]] %s1425_s29  ;;  %v402_v28 = vsub.f32 1.0, %v401_v36 }
  0xab   : > { %s1431_s16 = sld [smem:[#allocation2 + $0x31]]  ;;  %v577_v8 = vstv %s1427_s18  ;;  %v452_v18 = vadd.f32 %v451_v16, %v450_v21 }
  0xac   : > { %s1433_s2 = sld [smem:[#allocation2 + $0x32]] }
  0xad   : > { %s1435_s25 = sld [smem:[#allocation2 + $0x33]] }
  0xae   : > { %2091 = sst [smem:[#allocation67_spill]] %s1429_s11 }
  0xaf   : > { %s1437_s29 = sld [smem:[#allocation2 + $0x34]] }
  0xb0   : > { %s1440_s11 = sld [smem:[#allocation2 + $0x35]] }
  0xb1   : > { %2092 = sst [smem:[#allocation68_spill]] %s1431_s16 }
  0xb2   : > { %2093 = sst [smem:[#allocation69_spill]] %s1433_s2 }
  0xb3   : > { %2094 = sst [smem:[#allocation70_spill]] %s1435_s25 }
  0xb4   : > { %s1444_s2 = sld [smem:[#allocation2 + $0x36]] }
  0xb5   : > { %2095 = sst [smem:[#allocation71_spill]] %s1437_s29 }
  0xb6   : > { %2096 = sst [smem:[#allocation72_spill]] %s1440_s11 }
  0xb7   : > { %s1446_s25 = sld [smem:[#allocation2 + $0x37]] }
  0xb8   : > { %s1454_s11 = sld [smem:[#allocation2 + $0x38]] }
  0xb9   : > { %s1459_s29 = sld [smem:[#allocation2 + $0x39]] }
  0xba   : > { %2097 = sst [smem:[#allocation73_spill]] %s1444_s2 }
  0xbb   : > { %s1470_s2 = sld [smem:[#allocation2 + $0x3b]] }
  0xbc   : > { %s1476_s3 = sld [smem:[#allocation2 + $0x3c]] }
  0xbd   : > { %2098 = sst [smem:[#allocation74_spill]] %s1446_s25 }
  0xbe   : > { %s1464_s25 = sld [smem:[#allocation2 + $0x3a]] }
  0xbf   : > { %2101 = sst [smem:[#allocation75_spill]] %s1459_s29 }
  0xc0   : > { %s1484_s14 = sld [smem:[#allocation2 + $0x3d]] }
  0xc1   : > { %2102 = sst [smem:[#allocation76_spill]] %s1470_s2 }
  0xc2   : > { %2103 = sst [smem:[#allocation77_spill]] %s1476_s3 }
  0xc3   : > { %s2105_s17 = sld [smem:[#allocation42_spill]] }
  0xc4   : > { %s2106_s22 = sld [smem:[#allocation44_spill]] }
  0xc5   : > { %s2107_s21 = sld [smem:[#allocation45_spill]] }
  0xc6   : > { %2104 = sst [smem:[#allocation78_spill]] %s1484_s14 }
  0xc7   : > { %s1489_s20 = sld [smem:[#allocation2 + $0x3e]] }
  0xc8   : > { %s2109_s8 = sld [smem:[#allocation47_spill]] }
  0xc9   : > { %s2110_s7 = sld [smem:[#allocation49_spill]]  ;;  %v469_v45 = vstv %s2105_s17 }
  0xca   : > { %s2111_s19 = sld [smem:[#allocation48_spill]]  ;;  %v473_v46 = vstv %s2106_s22  ;;  %v470_v14 = vmul.f32 %v469_v45, %v1600_v13  ;;  %v476_v45 = vmul.f32 %v468_v22, %v468_v22 }
  0xcb   : > { %s2112_s28 = sld [smem:[#allocation46_spill]]  ;;  %v490_v47 = vstv %s2107_s21  ;;  %v474_v44 = vmul.f32 %v473_v46, %v1604_v26  ;;  %v427_v46 = vsub.f32 1.0, %v426_v23 }
  0xcc   : > { %s1495_s23 = sld [smem:[#allocation2 + $0x3f]]  ;;  %v472_v42 = vadd.f32 %v471_v43, %v470_v14 }
  0xcd   : > { %2108 = sst [smem:[#allocation79_spill]] %s1489_s20 }
  0xce   : > { %s2114_s26 = sld [smem:[#allocation50_spill]]  ;;  %v488_v48 = vstv %s2109_s8  ;;  %v475_v9 = vadd.f32 %v474_v44, %v472_v42 }
  0xcf   : > { %s2115_s30 = sld [smem:[#allocation51_spill]]  ;;  %v492_v49 = vstv %s2110_s7  ;;  %v489_v24 = vmul.f32 %v488_v48, %v1600_v13 }
  0xd0   : > { %s2116_s27 = sld [smem:[#allocation52_spill]]  ;;  %v495_v50 = vstv %s2111_s19  ;;  %v493_v29 = vmul.f32 %v492_v49, %v1604_v26  ;;  %v477_v19 = vmul.f32 %v475_v9, %v475_v9 }
  0xd1   : > { %s1502_s15 = sld [smem:[#allocation2 + $0x40]]  ;;  %v497_v51 = vstv %s2112_s28  ;;  %v496_v32 = vmul.f32 %v495_v50, %v1600_v13  ;;  %v491_v43 = vadd.f32 %v490_v47, %v489_v24  ;;  %v453_v47 = vsub.f32 1.0, %v452_v18 }
  0xd2   : > { %2113 = sst [smem:[#allocation80_spill]] %s1495_s23  ;;  %v478_v38 = vadd.f32 %v477_v19, %v476_v45 }
  0xd3   : > { %s2118_s5 = sld [smem:[#allocation53_spill]]  ;;  %v498_v48 = vadd.f32 %v497_v51, %v496_v32  ;;  %v494_v33 = vadd.f32 %v493_v29, %v491_v43 }
  0xd4   : > { %s2119_s20 = sld [smem:[#allocation55_spill]]  ;;  %v499_v52 = vstv %s2114_s26  ;;  %v479_v10 = vsub.f32 1.0, %v478_v38 }
  0xd5   : > { %s2120_s4 = sld [smem:[#allocation54_spill]]  ;;  %v516_v53 = vstv %s2115_s30  ;;  %v500_v49 = vmul.f32 %v499_v52, %v1604_v26  ;;  %v502_v31 = vmul.f32 %v494_v33, %v494_v33 }
  0xd6   : > { %s1508_s6 = sld [smem:[#allocation2 + $0x41]]  ;;  %v523_v54 = vstv %s2116_s27 }
  0xd7   : > { %2117 = sst [smem:[#allocation81_spill]] %s1502_s15  ;;  %v501_v25 = vadd.f32 %v500_v49, %v498_v48  ;;  %v2206_v49 = vstv %s1454_s11 }
  0xd8   : > { %s1514_s24 = sld [smem:[#allocation2 + $0x42]] }
  0xd9   : > { %s2123_s1 = sld [smem:[#allocation57_spill]]  ;;  %v514_v55 = vstv %s2118_s5  ;;  %v503_v39 = vmul.f32 %v501_v25, %v501_v25 }
  0xda   : > { %s2124_s0 = sld [smem:[#allocation58_spill]]  ;;  %v518_v56 = vstv %s2119_s20  ;;  %v515_v50 = vmul.f32 %v514_v55, %v1600_v13  ;;  %v526_v55 = vmul.f32 %v525_v58, %v1604_v26 }
  0xdb   : > { %s1520_s22 = sld [smem:[#allocation2 + $0x43]]  ;;  %v521_v57 = vstv %s2120_s4  ;;  %v519_v3 = vmul.f32 %v518_v56, %v1604_v26  ;;  %v541_v56 = vmul.f32 %v540_v61, %v1600_v13 }
  0xdc   : > { %2121 = sst [smem:[#allocation82_spill]] %s1508_s6  ;;  %v522_v51 = vmul.f32 %v521_v57, %v1600_v13  ;;  %v517_v52 = vadd.f32 %v516_v53, %v515_v50  ;;  %v619_v50 = vmul.f32 %v2206_v49, %v1600_v13 }
  0xdd   : > { %s2126_s21 = sld [smem:[#allocation60_spill]] }
  0xde   : > { %2122 = sst [smem:[#allocation83_spill]] %s1514_s24  ;;  %v524_v35 = vadd.f32 %v523_v54, %v522_v51  ;;  %v520_v53 = vadd.f32 %v519_v3, %v517_v52  ;;  %v2207_v3 = vstv %s1464_s25 }
  0xdf   : > { %s2127_s7 = sld [smem:[#allocation59_spill]]  ;;  %v542_v59 = vstv %s2123_s1 }
  0xe0   : > { %s2128_s28 = sld [smem:[#allocation64_spill]]  ;;  %v549_v60 = vstv %s2124_s0  ;;  %v543_v58 = vadd.f32 %v542_v59, %v541_v56  ;;  %v527_v27 = vadd.f32 %v526_v55, %v524_v35  ;;  %v528_v0 = vmul.f32 %v520_v53, %v520_v53 }
  0xe1   : > { %2125 = sst [smem:[#allocation84_spill]] %s1520_s22 }
  0xe2   : > { %s2129_s19 = sld [smem:[#allocation62_spill]] }
  0xe3   : > { %s1527_s8 = sld [smem:[#allocation2 + $0x44]]  ;;  %v544_v62 = vstv %s2126_s21 }
  0xe4   : > { %s2131_s30 = sld [smem:[#allocation65_spill]]  ;;  %v545_v57 = vmul.f32 %v544_v62, %v1604_v26  ;;  %v504_v62 = vadd.f32 %v503_v39, %v502_v31 }
  0xe5   : > { %s2132_s27 = sld [smem:[#allocation63_spill]]  ;;  %v547_v63 = vstv %s2127_s7 }
  0xe6   : > { %s2133_s26 = sld [smem:[#allocation66_spill]]  ;;  %v566_v2 = vstv %s2128_s28  ;;  %v548_v61 = vmul.f32 %v547_v63, %v1600_v13  ;;  %v546_v41 = vadd.f32 %v545_v57, %v543_v58  ;;  %v529_v63 = vmul.f32 %v527_v27, %v527_v27 }
  0xe7   : > { %s1535_s20 = sld [smem:[#allocation2 + $0x45]]  ;;  %v567_v54 = vmul.f32 %v566_v2, %v1600_v13  ;;  %v505_v14 = vsub.f32 1.0, %v504_v62 }
  0xe8   : > { %s2137_s5 = sld [smem:[#allocation71_spill]]  ;;  %v568_v4 = vstv %s2129_s19  ;;  %v550_v59 = vadd.f32 %v549_v60, %v548_v61  ;;  %v554_v21 = vmul.f32 %v546_v41, %v546_v41  ;;  %v578_v60 = vmul.f32 %v577_v8, %v1604_v26 }
  0xe9   : > { %2130 = sst [smem:[#allocation60_spill]] %s1527_s8  ;;  %v569_v20 = vadd.f32 %v568_v4, %v567_v54  ;;  %v530_v22 = vadd.f32 %v529_v63, %v528_v0 }
  0xea   : > { %s2138_s10 = sld [smem:[#allocation70_spill]]  ;;  %v573_v5 = vstv %s2131_s30  ;;  %v553_v36 = vadd.f32 %v552_v34, %v550_v59 }
  0xeb   : > { %s1542_s22 = sld [smem:[#allocation2 + $0x46]]  ;;  %v575_v6 = vstv %s2132_s27  ;;  %v574_v2 = vmul.f32 %v573_v5, %v1600_v13  ;;  %v531_v29 = vsub.f32 1.0, %v530_v22 }
  0xec   : > { %s1548_s9 = sld [smem:[#allocation2 + $0x47]]  ;;  %v570_v7 = vstv %s2133_s26  ;;  %v555_v5 = vmul.f32 %v553_v36, %v553_v36 }
  0xed   : > { %2135 = sst [smem:[#allocation59_spill]] %s1535_s20  ;;  %v571_v1 = vmul.f32 %v570_v7, %v1604_v26  ;;  %v576_v4 = vadd.f32 %v575_v6, %v574_v2 }
  0xee   : > { %s1554_s12 = sld [smem:[#allocation2 + $0x48]]  ;;  %v2197_v16 = vstv %s2137_s5  ;;  %v556_v9 = vadd.f32 %v555_v5, %v554_v21 }
  0xef   : > { %s2145_s19 = sld [smem:[#allocation79_spill]]  ;;  %v572_v44 = vadd.f32 %v571_v1, %v569_v20  ;;  %v597_v42 = vmul.f32 %v2197_v16, %v1604_v26  ;;  %v579_v32 = vadd.f32 %v578_v60, %v576_v4 }
  0xf0   : > { %s1560_s30 = sld [smem:[#allocation2 + $0x49]]  ;;  %v2198_v24 = vstv %s2138_s10  ;;  %v557_v56 = vsub.f32 1.0, %v556_v9 }
  0xf1   : > { %2140 = sst [smem:[#allocation64_spill]] %s1542_s22  ;;  %v674_v11 = vstv %s1542_s22  ;;  %v600_v8 = vmul.f32 %v2198_v24, %v1600_v13  ;;  %v580_v6 = vmul.f32 %v572_v44, %v572_v44  ;;  %v581_v19 = vmul.f32 %v579_v32, %v579_v32 }
  0xf2   : > { %2143 = sst [smem:[#allocation63_spill]] %s1548_s9  ;;  %v681_v12 = vstv %s1548_s9  ;;  %v675_v5 = vmul.f32 %v674_v11, %v1604_v26 }
  0xf3   : > { %s1566_s16 = sld [smem:[#allocation2 + $0x4a]]  ;;  %v582_v39 = vadd.f32 %v581_v19, %v580_v6 }
  0xf4   : > { %2144 = sst [smem:[#allocation66_spill]] %s1554_s12  ;;  %v698_v17 = vstv %s1554_s12 }
  0xf5   : > { %s1572_s8 = sld [smem:[#allocation2 + $0x4b]]  ;;  %v644_v15 = vstv %s2145_s19  ;;  %v583_v59 = vsub.f32 1.0, %v582_v39 }
  0xf6   : > { %2146 = sst [smem:[#allocation71_spill]] %s1560_s30  ;;  %v705_v30 = vstv %s1560_s30  ;;  %v645_v57 = vmul.f32 %v644_v15, %v1600_v13 }
  0xf7   : > { %s2192_s13 = sld [smem:[#allocation69_spill]] }
  0xf8   : > { %s2193_s7 = sld [smem:[#allocation72_spill]] }
  0xf9   : > { %v696_v37 = vstv %s1566_s16  ;;  %s2194_s21 = sld [smem:[#allocation67_spill]] }
  0xfa   : > { %s2195_s28 = sld [smem:[#allocation68_spill]] }
  0xfb   : > { %2149 = sst [smem:[#allocation70_spill]] %s1572_s8  ;;  %v703_v40 = vstv %s1572_s8 }
  0xfc   : > { %s2168_s8 = sld [smem:[#allocation20_spill]] }
  0xfd   : > { %v2196_v23 = vstv %s2192_s13  ;;  %s2199_s18 = sld [smem:[#allocation75_spill]] }
  0xfe   : > { %v593_v7 = vmul.f32 %v2196_v23, %v1600_v13  ;;  %s2201_s26 = sld [smem:[#allocation76_spill]] }
  0xff   : > { %s2203_s27 = sld [smem:[#allocation73_spill]] }
 0x100   : > { %s1758_s15 = sld [smem:[#allocation2 + $0x4c]]  ;;  %v2205_v43 = vstv %s2195_s28 }
 0x101   : > { %v602_v48 = vadd.f32 %v2205_v43, %v600_v8  ;;  %s2208_s10 = sld [smem:[#allocation74_spill]] }
 0x102   : > { %s989_s1 = smul.u32 120, %s2168_s8  ;;  %s2209_s5 = sld [smem:[#allocation81_spill]] }
 0x103   : > { %s1768_s14 = sld [smem:[#allocation2 + $0x4d]]  ;;  %v2210_v51 = vstv %s2199_s18 }
 0x104   : > { %s1684_s0 = scalar_lea.vmem [#allocation7], %s989_s1  ;;  %v626_v25 = vmul.f32 %v2210_v51, %v1600_v13  ;;  %v2211_v52 = vstv %s2201_s26  ;;  %s2212_s12 = sld [smem:[#allocation77_spill]] }
 0x105   : > { %403 = vst [vmem:[%s1684_s0] sm:$0xff] %v402_v28  ;;  %894 = vst [vmem:[%s1684_s0 + $0x8] sm:$0xff] %v427_v46  ;;  %v2200_v28 = vstv %s2193_s7  ;;  %v2202_v46 = vstv %s2194_s21  ;;  %v630_v55 = vmul.f32 %v2211_v52, %v1604_v26  ;;  %s2213_s11 = sld [smem:[#allocation80_spill]] }
 0x106   : > { %901 = vst [vmem:[%s1684_s0 + $0x10] sm:$0xff] %v453_v47  ;;  %908 = vst [vmem:[%s1684_s0 + $0x18] sm:$0xff] %v479_v10  ;;  %v604_v45 = vmul.f32 %v2200_v28, %v1604_v26  ;;  %v595_v18 = vadd.f32 %v2202_v46, %v593_v7  ;;  %v623_v47 = vmul.f32 %v2207_v3, %v1604_v26  ;;  %s1777_s19 = sld [smem:[#allocation2 + $0x4e]]  ;;  %v2214_v31 = vstv %s2203_s27 }
 0x107   : > { %915 = vst [vmem:[%s1684_s0 + $0x20] sm:$0xff] %v505_v14  ;;  %922 = vst [vmem:[%s1684_s0 + $0x28] sm:$0xff] %v531_v29  ;;  %v621_v35 = vadd.f32 %v2214_v31, %v619_v50  ;;  %s2215_s25 = sld [smem:[#allocation82_spill]]  ;;  %v2217_v58 = vstv %s2208_s10  ;;  %v697_v46 = vmul.f32 %v696_v37, %v1600_v13  ;;  %v700_v9 = vstv %s1758_s15 }
 0x108   : > { %v598_v33 = vadd.f32 %v597_v42, %v595_v18  ;;  %v605_v38 = vadd.f32 %v604_v45, %v602_v48  ;;  %s2216_s20 = sld [smem:[#allocation60_spill]]  ;;  %v628_v61 = vadd.f32 %v2217_v58, %v626_v25  ;;  %v2218_v10 = vstv %s2209_s5  ;;  %929 = vst [vmem:[%s1684_s0 + $0x30] sm:$0xff] %v557_v56  ;;  %936 = vst [vmem:[%s1684_s0 + $0x38] sm:$0xff] %v583_v59 }
 0x109   : > { %s1784_s22 = sld [smem:[#allocation2 + $0x4f]]  ;;  %v649_v27 = vmul.f32 %v2218_v10, %v1604_v26  ;;  %v624_v54 = vadd.f32 %v623_v47, %v621_v35  ;;  %v682_v45 = vmul.f32 %v681_v12, %v1604_v26  ;;  %v704_v12 = vmul.f32 %v703_v40, %v1600_v13 }
 0x10a   : > { %v606_v53 = vmul.f32 %v598_v33, %v598_v33  ;;  %s2219_s23 = sld [smem:[#allocation78_spill]]  ;;  %v607_v34 = vmul.f32 %v605_v38, %v605_v38  ;;  %v2220_v62 = vstv %s2212_s12  ;;  %v631_v63 = vadd.f32 %v630_v55, %v628_v61 }
 0x10b   : > { %s1791_s30 = sld [smem:[#allocation2 + $0x50]]  ;;  %v647_v15 = vadd.f32 %v2220_v62, %v645_v57  ;;  %v2222_v0 = vstv %s2213_s11  ;;  %v632_v21 = vmul.f32 %v624_v54, %v624_v54  ;;  %v707_v43 = vstv %s1768_s14  ;;  %s781_s14 = sshll.u32 %s1684_s0, 4  ;;  %s1886_s14 = int_to_ptr.vmem [resolvable:$true] %s781_s14 }
 0x10c   : > { %s2221_s4 = sld [smem:[#allocation83_spill]]  ;;  %v652_v41 = vmul.f32 %v2222_v0, %v1600_v13  ;;  %v608_v36 = vadd.f32 %v607_v34, %v606_v53  ;;  %v633_v4 = vmul.f32 %v631_v63, %v631_v63  ;;  %v699_v37 = vadd.f32 %v698_v17, %v697_v46 }
 0x10d   : > { %s2224_s3 = sld [smem:[#allocation59_spill]]  ;;  %v2225_v20 = vstv %s2215_s25  ;;  %v650_v60 = vadd.f32 %v649_v27, %v647_v15  ;;  %v701_v47 = vmul.f32 %v700_v9, %v1604_v26  ;;  %v706_v19 = vadd.f32 %v705_v30, %v704_v12 }
 0x10e   : > { %s1799_s24 = sld [smem:[#allocation2 + $0x51]]  ;;  %v656_v1 = vmul.f32 %v2225_v20, %v1604_v26  ;;  %v2226_v2 = vstv %s2216_s20  ;;  %v609_v24 = vsub.f32 1.0, %v608_v36  ;;  %v634_v29 = vadd.f32 %v633_v4, %v632_v21  ;;  %s769_s20 = scalar_lea.sflag [#allocation4], %s2168_s8 }
 0x10f   : > { %v671_v14 = vmul.f32 %v2226_v2, %v1600_v13  ;;  %s1807_s1 = sld [smem:[#allocation2 + $0x52]]  ;;  %v658_v28 = vmul.f32 %v650_v60, %v650_v60  ;;  %v708_v40 = vmul.f32 %v707_v43, %v1604_v26  ;;  %v724_v25 = vstv %s1777_s19 }
 0x110   : > { %v2228_v22 = vstv %s2219_s23  ;;  %s2229_s9 = sld [smem:[#allocation84_spill]]  ;;  %943 = vst [vmem:[%s1684_s0 + $0x40] sm:$0xff] %v609_v24  ;;  %v635_v48 = vsub.f32 1.0, %v634_v29  ;;  %v702_v55 = vadd.f32 %v701_v47, %v699_v37  ;;  %v731_v57 = vstv %s1784_s22  ;;  %s1103_s22 = scalar_lea.vmem %s1886_s14, 1920 }
 0x111   : > { %v654_v44 = vadd.f32 %v2228_v22, %v652_v41  ;;  %s1811_s2 = sld [smem:[#allocation2 + $0x53]]  ;;  %v722_v51 = vstv %s1791_s30  ;;  %v709_v56 = vadd.f32 %v708_v40, %v706_v19  ;;  %p1104_p6 = scmp.ne.s32.totalorder %s1886_s14, %s1103_s22 }
 0x112   : > { %v2230_v23 = vstv %s2221_s4  ;;  %s1822_s7 = sld [smem:[#allocation2 + $0x54]]  ;;  %950 = vst [vmem:[%s1684_s0 + $0x48] sm:$0xff] %v635_v48  ;;  %v723_v38 = vmul.f32 %v722_v51, %v1600_v13  ;;  %v710_v39 = vmul.f32 %v702_v55, %v702_v55  ;;  %s1181_s23 = smov [#allocation7]  }
 0x113   : > { %v673_v7 = vadd.f32 %v2230_v23, %v671_v14  ;;  %v2231_v16 = vstv %s2224_s3  ;;  %v657_v8 = vadd.f32 %v656_v1, %v654_v44  ;;  %s1827_s28 = sld [smem:[#allocation2 + $0x55]]  ;;  %v711_v53 = vmul.f32 %v709_v56, %v709_v56  ;;  %s1107_s30 = sshll.u32 %s1181_s23, 4  ;;  %s1108_s30 = int_to_ptr.vmem [resolvable:$false] %s1107_s30 }
 0x114   : > { %v678_v42 = vmul.f32 %v2231_v16, %v1600_v13  ;;  %s1834_s26 = sld [smem:[#allocation2 + $0x56]]  ;;  %v729_v35 = vstv %s1799_s24  ;;  %v725_v58 = vadd.f32 %v724_v25, %v723_v38  ;;  %s1109_s4 = scalar_lea.vmem %s1108_s30, 3840 }
 0x115   : > { %v676_v32 = vadd.f32 %v675_v5, %v673_v7  ;;  %v659_v18 = vmul.f32 %v657_v8, %v657_v8  ;;  %s1842_s27 = sld [smem:[#allocation2 + $0x57]]  ;;  %v726_v52 = vstv %s1807_s1  ;;  %v730_v61 = vmul.f32 %v729_v35, %v1600_v13  ;;  %p1110_p11 = scmp.lt.s32.totalorder %s1886_s14, %s1108_s30 }
 0x116   : > { %v2234_v6 = vstv %s2229_s9  ;;  %s1846_s16 = sld [smem:[#allocation2 + $0x58]]  ;;  %v727_v30 = vmul.f32 %v726_v52, %v1604_v26  ;;  %v712_v62 = vadd.f32 %v711_v53, %v710_v39  ;;  %p1111_p0 = scmp.lt.s32.totalorder %s1109_s4, %s1103_s22 }
 0x117   : > { %v680_v11 = vadd.f32 %v2234_v6, %v678_v42  ;;  %v684_v50 = vmul.f32 %v676_v32, %v676_v32  ;;  %v660_v3 = vadd.f32 %v659_v18, %v658_v28  ;;  %s1856_s29 = sld [smem:[#allocation2 + $0x59]]  ;;  %v733_v27 = vstv %s1811_s2 }
 0x118   : > { %v750_v54 = vstv %s1822_s7  ;;  %v728_v15 = vadd.f32 %v727_v30, %v725_v58  ;;  %v732_v0 = vadd.f32 %v731_v57, %v730_v61  ;;  %v734_v41 = vmul.f32 %v733_v27, %v1604_v26  ;;  %s2236_s15 = sld [smem:[#allocation15_spill]]  ;;  %p1112_p3 = por %p1111_p0, %p1110_p11 }
 0x119   : > { %v683_v49 = vadd.f32 %v682_v45, %v680_v11  ;;  %v661_v17 = vsub.f32 1.0, %v660_v3  ;;  %v757_v1 = vstv %s1827_s28  ;;  %v713_v2 = vsub.f32 1.0, %v712_v62  ;;  %s2237_s10 = sld [smem:[#allocation19_spill]] }
 0x11a   : > { %v748_v34 = vstv %s1834_s26  ;;  %v735_v14 = vadd.f32 %v734_v41, %v732_v0  ;;  %v736_v36 = vmul.f32 %v728_v15, %v728_v15  ;;  %s2238_s19 = sld [smem:[#allocation87_spill]] }
 0x11b   : > { %v685_v33 = vmul.f32 %v683_v49, %v683_v49  ;;  %957 = vst [vmem:[%s1684_s0 + $0x50] sm:$0xff] %v661_v17  ;;  %v749_v59 = vmul.f32 %v748_v34, %v1600_v13  ;;  %v755_v20 = vstv %s1842_s27  ;;  %971 = vst [vmem:[%s1684_s0 + $0x60] sm:$0xff] %v713_v2 }
 0x11c   : > { %v752_v63 = vstv %s1846_s16  ;;  %v756_v22 = vmul.f32 %v755_v20, %v1600_v13  ;;  %v737_v4 = vmul.f32 %v735_v14, %v735_v14 }
 0x11d   : > { %v686_v31 = vadd.f32 %v685_v33, %v684_v50  ;;  %v753_v21 = vmul.f32 %v752_v63, %v1604_v26  ;;  %v751_v60 = vadd.f32 %v750_v54, %v749_v59  ;;  %v759_v44 = vstv %s1856_s29 }
 0x11e   : > { %v760_v23 = vmul.f32 %v759_v44, %v1604_v26  ;;  %v758_v5 = vadd.f32 %v757_v1, %v756_v22  ;;  %v738_v16 = vadd.f32 %v737_v4, %v736_v36  ;;  %s986_s5 = sshll.u32 %s2236_s15, 7 }
 0x11f   : > { %v687_v10 = vsub.f32 1.0, %v686_v31  ;;  %v754_v7 = vadd.f32 %v753_v21, %v751_v60  ;;  %p2239_p8 = scmp.ne.s32.totalorder %s2237_s10, 0 }
 0x120   : > { %v761_v42 = vadd.f32 %v760_v23, %v758_v5  ;;  %v739_v8 = vsub.f32 1.0, %v738_v16  ;;  %s1884_s25 = scalar_lea.hbm %s2238_s19, %s986_s5 }
 0x121   : > { %964 = vst [vmem:[%s1684_s0 + $0x58] sm:$0xff] %v687_v10  ;;  %v762_v24 = vmul.f32 %v754_v7, %v754_v7  ;;  %p1105_p7 = pnand %p1104_p6, %p2239_p8 }
 0x122   : > { %v763_v28 = vmul.f32 %v761_v42, %v761_v42  ;;  %978 = vst [vmem:[%s1684_s0 + $0x68] sm:$0xff] %v739_v8 }
 0x123   : > { %p1106_p10 = pneg %p1105_p7 }
 0x124   : > { %v764_v45 = vadd.f32 %v763_v28, %v762_v24 }
 0x125   : > { %p1113_p5 = pnand %p1112_p3, %p1106_p10 }
 0x126   : > { %v765_v13 = vsub.f32 1.0, %v764_v45 }
 0x128   : > { %985 = vst [vmem:[%s1684_s0 + $0x70] sm:$0xff] %v765_v13 }
 0x129   : > { %1116 = shalt.err (!%p1113_p5)
}
 0x12a   : > { %s1117_s0 = scalar_lea.hbm %s1884_s25, 1920  ;;  %s1121_s24 = scalar_lea.hbm %s2238_s19, 3840 }
 0x12b   : > { %p1118_p2 = scmp.ne.s32.totalorder %s1884_s25, %s1117_s0  ;;  %p1122_p9 = scmp.lt.s32.totalorder %s1884_s25, %s2238_s19 }
 0x12c   : > { %p1123_p1 = scmp.lt.s32.totalorder %s1121_s24, %s1117_s0 }
 0x12d   : > { %p1119_p12 = pnand %p1118_p2, %p2239_p8 }
 0x12e   : > { %p1124_p4 = por %p1123_p1, %p1122_p9 }
 0x12f   : > { %p1120_p13 = pneg %p1119_p12 }
 0x131   : > { %p1125_p6 = pnand %p1124_p4, %p1120_p13 }
 0x133   : > { %1128 = shalt.err (!%p1125_p6)
}
 0x134   : > { %s1182_s9 = smov 128   ;;  %s1183_s2 = smov 256  }
 0x135   : > { %s1184_s13 = smov 8  }
 0x136   : > { %1000 = dma.vmem_to_hbm [thread:$0]  (%p2239_p8), %s1886_s14, 1920, %s1884_s25, %s769_s20, %s1182_s9, %s1183_s2, %s1184_s13  }
 0x137 PF: > { %s2240_s7 = sld [smem:[#allocation11_spill]] }
 0x138   : > { %s2241_s21 = sld [smem:[#allocation16_spill]] }
 0x139   : > { %s2242_s28 = sld [smem:[#allocation14_spill]] }
 0x13d   : > { %s796_s18 = sand.u32 1, %s2240_s7  }
 0x13e   : > { %p2243_p7 = scmp.ne.s32.totalorder %s2241_s21, 0  ;;  %s797_s26 = scalar_lea.sflag [#allocation4], %s796_s18 }
 0x13f   : > { %p2244_p10 = scmp.ge.s32.totalorder %s2242_s28, 2 }
 0x141   : > { %p1011_p11 = pnand %p2244_p10, %p2243_p7 }
 0x143   : > { %p1012_p0 = pneg %p1011_p11 }
 0x145   : > { %1154 = dma.done.wait (%p1012_p0), %s797_s26, 1920  }
 0x146   : > { %1156 = vsyncadd (%p1012_p0), %s797_s26, 4294965376  ;;  %s2245_s12 = sld [smem:[#allocation17_spill]] }
 0x147   : > { %s2246_s9 = sld [smem:[#allocation12_spill]] }
 0x148   : > { %s2247_s10 = sld [smem:[#allocation13_spill]] }
 0x149   : > { %s2248_s11 = sld [smem:[#allocation18_spill]] }
 0x14c   : > { %p16_p3 = scmp.ge.s32.totalorder %s2245_s12, 4  }
 0x14e   :  { %18 = sbr.rel (!%p16_p3) target bundleno = 10 (0xa), region = 92 }
 0x153   :  { %802 = vsyncpa [#allocation3], 1 }
 0x154   :  { %804 = vsyncpa [#allocation3 + $0x1], 1 }
 0x155   :  { %805 = vsyncpa [#allocation4], 1 }
 0x156   :  { %807 = vsyncpa [#allocation4 + $0x1], 1 }
 0x157   :  { %808 = vsyncpa [#allocation5], 1 }
 0x158   :  { %810 = vsyncpa [#allocation5 + $0x1], 1 }

</bundles_post_ra>
